<compile_context>
chip_gen: v7x
topology: tpu7x:2x2x1
jax: 0.10.0
libtpu: 0.0.40
codegen_flags: <defaults>
</compile_context>

<pallas_src>
import functools

import jax
import jax.numpy as jnp
from jax import lax
from jax.experimental import pallas as pl
from jax.experimental.pallas import tpu as pltpu


def _round_up(x, m):
    return (x + m - 1) // m * m


def _cdiv(a, b):
    return -(-a // b)


# --------------------------- VMEM budget / tiling --------------------------- #
def _vmem_capacity_bytes():
    try:
        return int(pltpu.get_tpu_info().vmem_capacity_bytes)
    except Exception:
        return 64 << 20                      # conservative (v7x per-TC VMEM)


def _vmem_footprint_bytes(tc, bt, in_dim, H, O, io_bytes, w_bytes):
    x_io = 2 * tc * bt * in_dim * io_bytes                 # x chunk (dbl-buf)
    y_io = 2 * tc * bt * O * io_bytes                      # y chunk (dbl-buf)
    h_io = 2 * bt * H * 4 * 2                              # h0 in + h_last out
    wgt = (2 * in_dim * H + H * H + H * O) * w_bytes       # single-buffered
    wgt += (2 * H + O) * 4                                 # f32 biases
    scr = (bt * H + 2 * tc * bt * H) * 4                   # carried h + z + gz
    return x_io + y_io + h_io + wgt + scr


def _select_tiles(B, T, max_in, H, O, io_bytes, w_bytes, sublane):
    """Pick (bt, B_pad, tc, vmem_limit_bytes) from the per-core VMEM budget."""
    B_a = _round_up(max(B, 1), sublane)
    if B_a >= 2 * sublane:
        # >=2 batch tiles: shards the "parallel" axis across both TCs on v7x
        # and halves per-TC scratch; cap a tile at ~256 rows for MXU fill.
        n_bt = max(2, _cdiv(B_a, 256))
        bt = _round_up(_cdiv(B_a, n_bt), sublane)
    else:
        bt = B_a
    B_pad = _round_up(B_a, bt)

    budget = (_vmem_capacity_bytes() * 3) // 4             # compiler headroom
    tc = 1
    for cand in (64, 32, 16, 8, 4, 2, 1):                  # big tiles first
        if cand > T:
            continue
        if _vmem_footprint_bytes(cand, bt, max_in, H, O,
                                 io_bytes, w_bytes) <= budget:
            tc = cand
            break
    fp = _vmem_footprint_bytes(tc, bt, max_in, H, O, io_bytes, w_bytes)
    vmem_limit = int(min(budget, max(2 * fp, 32 << 20)))
    return bt, B_pad, tc, vmem_limit


# ------------------------------ Pallas kernel ------------------------------ #
def _minimal_rnn_cell_kernel(
        x_ref, w_in_ref, b_in_ref, w_gz_ref, b_gz_ref, w_gh_ref, w_out_ref,
        b_out_ref, h0_ref,                      # inputs
        y_ref, h_out_ref,                       # outputs
        h_scratch, z_scr, gz_scr,               # VMEM scratch
        *, t_valid, mask_tail, unroll):
    tc, bt, _ = x_ref.shape
    H = w_gh_ref.shape[0]
    O = w_out_ref.shape[1]
    c = pl.program_id(1)                        # time-chunk index (serial axis)

    # Initialize the carried hidden state at the first chunk of this batch tile.
    @pl.when(c == 0)
    def _():
        h_scratch[...] = h0_ref[...].astype(jnp.float32)

    # ---- pre-pass (hoisted out of the serial chain): large MXU matmuls ---- #
    #   z  = x @ W_in^T + b_in
    #   gz = x @ (W_in^T W_gz) + (b_in W_gz + b_g)      (pre-fused in prep)
    cdt = w_in_ref.dtype                        # MXU compute dtype (f32/bf16)
    x2 = x_ref[...].reshape(tc * bt, x_ref.shape[2]).astype(cdt)
    z2 = jnp.dot(x2, w_in_ref[...],
                 preferred_element_type=jnp.float32) + b_in_ref[...]
    gz2 = jnp.dot(x2, w_gz_ref[...],
                  preferred_element_type=jnp.float32) + b_gz_ref[...]
    z_scr[...] = z2.reshape(tc, bt, H)
    gz_scr[...] = gz2.reshape(tc, bt, H)

    # ---- serial recurrence: only h @ W_gh + sigmoid + blend per step ------ #
    w_gh = w_gh_ref[...]                        # hoisted load (loop-invariant)

    def step(t, h):
        z_t = z_scr[t]                          # (bt, H), f32
        gz_t = gz_scr[t]
        u = jax.nn.sigmoid(
            jnp.dot(h.astype(w_gh.dtype), w_gh,
                    preferred_element_type=jnp.float32) + gz_t)
        h_new = u * h + (1.0 - u) * z_t
        if mask_tail:                           # freeze h on padded time steps
            h_new = jnp.where(c * tc + t < t_valid, h_new, h)
        z_scr[t] = h_new                        # reuse z storage: z_t is dead
        return h_new

    h_final = lax.fori_loop(0, tc, step, h_scratch[...], unroll=unroll)
    h_scratch[...] = h_final

    # ---- post-pass (hoisted): one batched output matmul per chunk --------- #
    hs2 = z_scr[...].reshape(tc * bt, H).astype(w_out_ref.dtype)
    y2 = jnp.dot(hs2, w_out_ref[...],
                 preferred_element_type=jnp.float32) + b_out_ref[...]
    y_ref[...] = y2.reshape(tc, bt, O).astype(y_ref.dtype)

    # Write the final hidden state exactly once (last chunk).
    @pl.when(c == pl.num_programs(1) - 1)
    def _():
        h_out_ref[...] = h_final.astype(h_out_ref.dtype)


def _minimal_rnn_cell(x_tm, h0, params, *, t_valid, tc, bt, out_dtype,
                      vmem_limit):
    """One MinimalRNNCell over a padded sequence.

    x_tm: (T_pad, B_pad, I_in) time-major, h0: (B_pad, H_pad); params padded.
    """
    w_in, b_in, w_ingz, b_gz, w_gh, w_out, b_out = params
    T_pad, B_pad, I_in = x_tm.shape
    H = w_gh.shape[0]
    O = w_out.shape[1]
    n_chunks = T_pad // tc
    n_btiles = B_pad // bt

    unroll = True if tc <= 16 else 8            # cap vreg pressure at large tc
    kernel = functools.partial(_minimal_rnn_cell_kernel,
                               t_valid=t_valid, mask_tail=(T_pad != t_valid),
                               unroll=unroll)
    wconst = lambda b, c: (0, 0)                # weights/biases: constant block

    def wspec(shape):                           # single-buffered constant block
        return pl.BlockSpec(shape, wconst, pipeline_mode=pl.Buffered(1))

    y, h_last = pl.pallas_call(
        kernel,
        out_shape=(jax.ShapeDtypeStruct((T_pad, B_pad, O), out_dtype),
                   jax.ShapeDtypeStruct((B_pad, H), h0.dtype)),
        grid_spec=pltpu.PrefetchScalarGridSpec(
            num_scalar_prefetch=0,
            grid=(n_btiles, n_chunks),
            in_specs=[
                pl.BlockSpec((tc, bt, I_in), lambda b, c: (c, b, 0)),  # x chunk
                wspec((I_in, H)),               # W_in^T
                wspec((1, H)),                  # b_in                 (f32)
                wspec((I_in, H)),               # W_in^T @ W_gz  (fused gz)
                wspec((1, H)),                  # b_in @ W_gz + b_g    (f32)
                wspec((H, H)),                  # W_gh (acts on h)
                wspec((H, O)),                  # W_out^T
                wspec((1, O)),                  # b_out                (f32)
                pl.BlockSpec((bt, H), lambda b, c: (b, 0)),            # h0
            ],
            out_specs=(pl.BlockSpec((tc, bt, O), lambda b, c: (c, b, 0)),
                       pl.BlockSpec((bt, H), lambda b, c: (b, 0))),
            scratch_shapes=[
                pltpu.VMEM((bt, H), jnp.float32),       # carried hidden state
                pltpu.VMEM((tc, bt, H), jnp.float32),   # z chunk -> h sequence
                pltpu.VMEM((tc, bt, H), jnp.float32),   # gate(z) chunk
            ],
        ),
        compiler_params=pltpu.CompilerParams(
            dimension_semantics=("parallel", "arbitrary"),
            vmem_limit_bytes=vmem_limit),
    )(x_tm, w_in, b_in, w_ingz, b_gz, w_gh, w_out, b_out, h0)
    return y, h_last


# --------------------------- params: init & prep --------------------------- #
def init_torch_params(key, input_size, hidden_size, output_size,
                      dtype=jnp.float32):
    """nn.Linear-style init, kept in the PyTorch (out, in) layout."""
    ks = jax.random.split(key, 6)

    def linear(kw, kb, fan_in, fan_out):
        bound = 1.0 / jnp.sqrt(fan_in)
        w = jax.random.uniform(kw, (fan_out, fan_in), dtype, -bound, bound)
        b = jax.random.uniform(kb, (fan_out,), dtype, -bound, bound)
        return w, b

    w_in, b_in = linear(ks[0], ks[1], input_size, hidden_size)
    w_gate, b_g = linear(ks[2], ks[3], 2 * hidden_size, hidden_size)
    w_out, b_out = linear(ks[4], ks[5], hidden_size, output_size)
    return (w_in, b_in, w_gate, b_g, w_out, b_out)


def init_minimal_rnn(key, input_size, hidden_size, num_layers,
                     dtype=jnp.float32):
    keys = jax.random.split(key, num_layers)
    params = [init_torch_params(keys[0], input_size, hidden_size, hidden_size,
                                dtype)]
    for i in range(1, num_layers):
        params.append(init_torch_params(keys[i], hidden_size, hidden_size,
                                        hidden_size, dtype))
    return params


def _pad_to(a, shape):
    return jnp.pad(a, [(0, s - d) for d, s in zip(a.shape, shape)])


def prep_layer_params(torch_layer_params, hidden_size,
                      param_dtype=jnp.float32):
    """Transpose / split / pre-fuse / zero-pad torch params into kernel layout.

    Gate weight is split into the columns acting on h ([:, :H]) and on z
    ([:, H:]), matching torch.cat([h, z], dim=1) @ W_gate^T.  The z->gate path
    is pre-fused (gz = x @ (W_in^T W_gz) + (b_in W_gz + b_g)) in f32.  Weights
    are cast to `param_dtype` (bf16 recommended on v6e/v7x); biases stay f32.
    Zero padding of H/O to multiples of 128 is mathematically inert.
    """
    H = hidden_size
    H_pad = _round_up(H, 128)
    prepped = []
    for l, (w_in, b_in, w_gate, b_g, w_out, b_out) in enumerate(
            torch_layer_params):
        in_dim = w_in.shape[1]
        # Layer 0 sees the raw input width; deeper layers see the padded
        # activation stream (previous layer's padded output width).
        in_pad = in_dim if l == 0 else _round_up(in_dim, 128)
        out_pad = _round_up(w_out.shape[0], 128)
        w_gh = w_gate[:, :H].T                  # (H, H): acts on h
        w_gz = w_gate[:, H:].T                  # (H, H): acts on z
        w_ingz = w_in.T @ w_gz                  # pre-fused gz weight (f32)
        b_gz = b_in @ w_gz + b_g                # pre-fused gz bias   (f32)
        wd = param_dtype
        prepped.append((
            _pad_to(w_in.T, (in_pad, H_pad)).astype(wd),        # W_in^T
            _pad_to(b_in[None, :], (1, H_pad)).astype(jnp.float32),
            _pad_to(w_ingz, (in_pad, H_pad)).astype(wd),         # W_in^T W_gz
            _pad_to(b_gz[None, :], (1, H_pad)).astype(jnp.float32),
            _pad_to(w_gh, (H_pad, H_pad)).astype(wd),            # W_gh
            _pad_to(w_out.T, (H_pad, out_pad)).astype(wd),       # W_out^T
            _pad_to(b_out[None, :], (1, out_pad)).astype(jnp.float32),
        ))
    return prepped


# ------------------------------ forward wrapper ----------------------------- #
def minimal_rnn_forward(x, h, layer_params, hidden_size, batch_first=True):
    """x: (B, T, I) if batch_first else (T, B, I). h: (L, B, H) or None."""
    if batch_first:
        x = jnp.transpose(x, (1, 0, 2))                  # -> (T, B, I)
    T, B, _ = x.shape
    L = len(layer_params)
    H = hidden_size
    H_pad = layer_params[0][4].shape[0]                  # W_gh is (H_pad, H_pad)

    w_dtype = layer_params[0][0].dtype
    stream_dtype = w_dtype                               # inter-layer activation dtype
    sublane = max(8, 32 // jnp.dtype(stream_dtype).itemsize)
    io_bytes = max(jnp.dtype(x.dtype).itemsize,
                   jnp.dtype(stream_dtype).itemsize)
    w_bytes = jnp.dtype(w_dtype).itemsize
    max_in = max(p[0].shape[0] for p in layer_params)
    O_pad = layer_params[-1][5].shape[1]

    bt, B_pad, tc, vmem_limit = _select_tiles(
        B, T, max_in, H_pad, O_pad, io_bytes, w_bytes, sublane)
    T_pad = _round_up(T, tc)

    if h is None:
        h = jnp.zeros((L, B, H), x.dtype)

    # Zero-pad batch / time / hidden; padded lanes never mix with real ones.
    x_p = jnp.pad(x, ((0, T_pad - T), (0, B_pad - B), (0, 0)))
    h_p = jnp.pad(h.astype(jnp.float32),
                  ((0, 0), (0, B_pad - B), (0, H_pad - H)))

    h_finals = []
    for l, params in enumerate(layer_params):
        out_dt = x.dtype if l == L - 1 else stream_dtype
        x_p, h_l = _minimal_rnn_cell(x_p, h_p[l], params, t_valid=T, tc=tc,
                                     bt=bt, out_dtype=out_dt,
                                     vmem_limit=vmem_limit)
        h_finals.append(h_l[:B, :H].astype(x.dtype))
    h_out = jnp.stack(h_finals, axis=0)

    y = x_p[:T, :B, :H]                                  # strip padding
    if batch_first:
        y = jnp.transpose(y, (1, 0, 2))                  # back to (B, T, H)
    return y, h_out


# ---------------------------- pure-JAX reference ---------------------------- #
def _ref_cell(x_tm, h0, torch_params):
    w_in, b_in, w_gate, b_g, w_out, b_out = torch_params

    def step(h, x):
        z = x @ w_in.T + b_in
        u = jax.nn.sigmoid(jnp.concatenate([h, z], axis=1) @ w_gate.T + b_g)
        h = u * h + (1.0 - u) * z
        y = h @ w_out.T + b_out
        return h, y

    h_last, ys = lax.scan(step, h0, x_tm)
    return ys, h_last


def _ref_forward(x, h, torch_layer_params, hidden_size):
    x = jnp.transpose(x, (1, 0, 2))
    L = len(torch_layer_params)
    if h is None:
        h = jnp.zeros((L, x.shape[1], hidden_size), x.dtype)
    hs = []
    for l, p in enumerate(torch_layer_params):
        x, hl = _ref_cell(x, h[l], p)
        hs.append(hl)
    return jnp.transpose(x, (1, 0, 2)), jnp.stack(hs, 0)


# ----------------------------------- main ----------------------------------- #
if __name__ == "__main__":
    B, T, I, H, L = 2, 8, 4, 32, 2

    key = jax.random.PRNGKey(0)
    k_params, k_x, k_h = jax.random.split(key, 3)

    torch_params = init_minimal_rnn(k_params, I, H, L)
    x = jax.random.normal(k_x, (B, T, I), jnp.float32)
    h0 = jax.random.normal(k_h, (L, B, H), jnp.float32)

    y_ref, h_ref = _ref_forward(x, h0, torch_params, H)

    fwd = jax.jit(minimal_rnn_forward,
                  static_argnames=("hidden_size", "batch_first"))

    # f32 weights: tight check against the pure-JAX reference (the pre-fused
    # gz path only reassociates the f32 math).
    prepped = prep_layer_params(torch_params, H, param_dtype=jnp.float32)
    y, h_final = fwd(x, h0, prepped, hidden_size=H)
    jax.block_until_ready((y, h_final))
    assert y.shape == (B, T, H) and h_final.shape == (L, B, H)
    assert jnp.allclose(y, y_ref, atol=1e-4, rtol=1e-4), \
        float(jnp.max(jnp.abs(y - y_ref)))
    assert jnp.allclose(h_final, h_ref, atol=1e-4, rtol=1e-4), \
        float(jnp.max(jnp.abs(h_final - h_ref)))

    # bf16 weights + bf16 inter-layer stream (the v6e/v7x production config):
    # loose check (MXU path rounds weights/activations to bf16).
    prepped_bf16 = prep_layer_params(torch_params, H, param_dtype=jnp.bfloat16)
    y16, h16 = fwd(x, h0, prepped_bf16, hidden_size=H)
    jax.block_until_ready((y16, h16))
    assert jnp.allclose(y16, y_ref, atol=1e-1, rtol=1e-1)
    assert jnp.allclose(h16, h_ref, atol=1e-1, rtol=1e-1)

    print("KERNEL_OK")
</pallas_src>

<mosaic_0001>
module attributes {stable_mosaic.version = 11 : i64} {
  func.func @_minimal_rnn_cell_kernel(%arg0: i32, %arg1: i32, %arg2: memref<8x8x4xf32, #tpu.memory_space<vmem>>, %arg3: memref<4x128xf32, #tpu.memory_space<vmem>>, %arg4: memref<1x128xf32, #tpu.memory_space<vmem>>, %arg5: memref<4x128xf32, #tpu.memory_space<vmem>>, %arg6: memref<1x128xf32, #tpu.memory_space<vmem>>, %arg7: memref<128x128xf32, #tpu.memory_space<vmem>>, %arg8: memref<128x128xf32, #tpu.memory_space<vmem>>, %arg9: memref<1x128xf32, #tpu.memory_space<vmem>>, %arg10: memref<8x128xf32, #tpu.memory_space<vmem>>, %arg11: memref<8x8x128xf32, #tpu.memory_space<vmem>>, %arg12: memref<8x128xf32, #tpu.memory_space<vmem>>, %arg13: memref<8x128xf32, #tpu.memory_space<vmem>>, %arg14: memref<8x8x128xf32, #tpu.memory_space<vmem>>, %arg15: memref<8x8x128xf32, #tpu.memory_space<vmem>>) attributes {dimension_semantics = [#tpu.dimension_semantics<parallel>, #tpu.dimension_semantics<arbitrary>], iteration_bounds = array<i64: 1, 1>, scalar_prefetch = 0 : i64, scratch_operands = 3 : i64, tpu.core_type = #tpu.core_type<tc>, window_params = [{transform_indices = @transform_0, window_bounds = array<i64: 8, 8, 4>}, {pipeline_mode = #tpu.pipeline_mode<synchronous>, transform_indices = @transform_1, window_bounds = array<i64: 4, 128>}, {pipeline_mode = #tpu.pipeline_mode<synchronous>, transform_indices = @transform_2, window_bounds = array<i64: 1, 128>}, {pipeline_mode = #tpu.pipeline_mode<synchronous>, transform_indices = @transform_3, window_bounds = array<i64: 4, 128>}, {pipeline_mode = #tpu.pipeline_mode<synchronous>, transform_indices = @transform_4, window_bounds = array<i64: 1, 128>}, {pipeline_mode = #tpu.pipeline_mode<synchronous>, transform_indices = @transform_5, window_bounds = array<i64: 128, 128>}, {pipeline_mode = #tpu.pipeline_mode<synchronous>, transform_indices = @transform_6, window_bounds = array<i64: 128, 128>}, {pipeline_mode = #tpu.pipeline_mode<synchronous>, transform_indices = @transform_7, window_bounds = array<i64: 1, 128>}, {transform_indices = @transform_8, window_bounds = array<i64: 8, 128>}, {transform_indices = @transform_9, window_bounds = array<i64: 8, 8, 128>}, {transform_indices = @transform_10, window_bounds = array<i64: 8, 128>}]} {
    %c0_i32 = arith.constant 0 : i32
    %0 = arith.cmpi eq, %arg1, %c0_i32 : i32
    %1 = arith.extui %0 : i1 to i32
    %c0_i32_0 = arith.constant 0 : i32
    %2 = arith.cmpi ne, %1, %c0_i32_0 : i32
    scf.if %2 {
      %c0_110 = arith.constant 0 : index
      %c0_111 = arith.constant 0 : index
      %210 = vector.load %arg10[%c0_110, %c0_111] : memref<8x128xf32, #tpu.memory_space<vmem>>, vector<8x128xf32>
      %c0_112 = arith.constant 0 : index
      %c0_113 = arith.constant 0 : index
      %211 = vector.load %arg13[%c0_112, %c0_113] : memref<8x128xf32, #tpu.memory_space<vmem>>, vector<8x128xf32>
      tpu.vector_store %arg13[%c0_112, %c0_113], %210 {strides = array<i32>} : memref<8x128xf32, #tpu.memory_space<vmem>>, vector<8x128xf32>,
    } else {
    }
    %c0 = arith.constant 0 : index
    %c0_1 = arith.constant 0 : index
    %c0_2 = arith.constant 0 : index
    %3 = vector.load %arg2[%c0, %c0_1, %c0_2] : memref<8x8x4xf32, #tpu.memory_space<vmem>>, vector<8x8x4xf32>
    %4 = vector.shape_cast %3 : vector<8x8x4xf32> to vector<64x4xf32>
    %c0_3 = arith.constant 0 : index
    %c0_4 = arith.constant 0 : index
    %5 = vector.load %arg3[%c0_3, %c0_4] : memref<4x128xf32, #tpu.memory_space<vmem>>, vector<4x128xf32>
    %cst = arith.constant dense<0.000000e+00> : vector<64x128xf32>
    %6 = tpu.matmul %4, %5, %cst {dimension_numbers = #tpu.dot_dimension_numbers<[1], [0], [0], [1], [0, 0, 1, 1], [], []>} : vector<64x4xf32>, vector<4x128xf32>, vector<64x128xf32> -> vector<64x128xf32>
    %c0_5 = arith.constant 0 : index
    %c0_6 = arith.constant 0 : index
    %7 = vector.load %arg4[%c0_5, %c0_6] : memref<1x128xf32, #tpu.memory_space<vmem>>, vector<1x128xf32>
    %8 = vector.broadcast %7 : vector<1x128xf32> to vector<64x128xf32>
    %9 = arith.addf %6, %8 : vector<64x128xf32>
    %c0_7 = arith.constant 0 : index
    %c0_8 = arith.constant 0 : index
    %10 = vector.load %arg5[%c0_7, %c0_8] : memref<4x128xf32, #tpu.memory_space<vmem>>, vector<4x128xf32>
    %cst_9 = arith.constant dense<0.000000e+00> : vector<64x128xf32>
    %11 = tpu.matmul %4, %10, %cst_9 {dimension_numbers = #tpu.dot_dimension_numbers<[1], [0], [0], [1], [0, 0, 1, 1], [], []>} : vector<64x4xf32>, vector<4x128xf32>, vector<64x128xf32> -> vector<64x128xf32>
    %c0_10 = arith.constant 0 : index
    %c0_11 = arith.constant 0 : index
    %12 = vector.load %arg6[%c0_10, %c0_11] : memref<1x128xf32, #tpu.memory_space<vmem>>, vector<1x128xf32>
    %13 = vector.broadcast %12 : vector<1x128xf32> to vector<64x128xf32>
    %14 = arith.addf %11, %13 : vector<64x128xf32>
    %15 = vector.shape_cast %9 : vector<64x128xf32> to vector<8x8x128xf32>
    %c0_12 = arith.constant 0 : index
    %c0_13 = arith.constant 0 : index
    %c0_14 = arith.constant 0 : index
    %16 = vector.load %arg14[%c0_12, %c0_13, %c0_14] : memref<8x8x128xf32, #tpu.memory_space<vmem>>, vector<8x8x128xf32>
    tpu.vector_store %arg14[%c0_12, %c0_13, %c0_14], %15 {strides = array<i32>} : memref<8x8x128xf32, #tpu.memory_space<vmem>>, vector<8x8x128xf32>,
    %17 = vector.shape_cast %14 : vector<64x128xf32> to vector<8x8x128xf32>
    %c0_15 = arith.constant 0 : index
    %c0_16 = arith.constant 0 : index
    %c0_17 = arith.constant 0 : index
    %18 = vector.load %arg15[%c0_15, %c0_16, %c0_17] : memref<8x8x128xf32, #tpu.memory_space<vmem>>, vector<8x8x128xf32>
    tpu.vector_store %arg15[%c0_15, %c0_16, %c0_17], %17 {strides = array<i32>} : memref<8x8x128xf32, #tpu.memory_space<vmem>>, vector<8x8x128xf32>,
    %c0_18 = arith.constant 0 : index
    %c0_19 = arith.constant 0 : index
    %19 = vector.load %arg7[%c0_18, %c0_19] : memref<128x128xf32, #tpu.memory_space<vmem>>, vector<128x128xf32>
    %c0_20 = arith.constant 0 : index
    %c0_21 = arith.constant 0 : index
    %20 = vector.load %arg13[%c0_20, %c0_21] : memref<8x128xf32, #tpu.memory_space<vmem>>, vector<8x128xf32>
    %c0_i32_22 = arith.constant 0 : i32
    %21 = arith.index_cast %c0_i32_22 : i32 to index
    %c0_23 = arith.constant 0 : index
    %c0_24 = arith.constant 0 : index
    %22 = vector.load %arg14[%21, %c0_23, %c0_24] : memref<8x8x128xf32, #tpu.memory_space<vmem>>, vector<1x8x128xf32>
    %23 = vector.shape_cast %22 : vector<1x8x128xf32> to vector<8x128xf32>
    %24 = arith.index_cast %c0_i32_22 : i32 to index
    %c0_25 = arith.constant 0 : index
    %c0_26 = arith.constant 0 : index
    %25 = vector.load %arg15[%24, %c0_25, %c0_26] : memref<8x8x128xf32, #tpu.memory_space<vmem>>, vector<1x8x128xf32>
    %26 = vector.shape_cast %25 : vector<1x8x128xf32> to vector<8x128xf32>
    %cst_27 = arith.constant dense<0.000000e+00> : vector<8x128xf32>
    %27 = tpu.matmul %20, %19, %cst_27 {dimension_numbers = #tpu.dot_dimension_numbers<[1], [0], [0], [1], [0, 0, 1, 1], [], []>} : vector<8x128xf32>, vector<128x128xf32>, vector<8x128xf32> -> vector<8x128xf32>
    %28 = arith.addf %27, %26 : vector<8x128xf32>
    %29 = arith.negf %28 : vector<8x128xf32>
    %30 = math.exp %29 : vector<8x128xf32>
    %cst_28 = arith.constant 1.000000e+00 : f32
    %31 = vector.broadcast %cst_28 : f32 to vector<8x128xf32>
    %32 = arith.addf %31, %30 : vector<8x128xf32>
    %33 = arith.divf %31, %32 : vector<8x128xf32>
    %34 = arith.mulf %33, %20 : vector<8x128xf32>
    %cst_29 = arith.constant 1.000000e+00 : f32
    %35 = vector.broadcast %cst_29 : f32 to vector<8x128xf32>
    %36 = arith.subf %35, %33 : vector<8x128xf32>
    %37 = arith.mulf %36, %23 : vector<8x128xf32>
    %38 = arith.addf %34, %37 : vector<8x128xf32>
    %39 = arith.index_cast %c0_i32_22 : i32 to index
    %c0_30 = arith.constant 0 : index
    %c0_31 = arith.constant 0 : index
    %40 = vector.load %arg14[%39, %c0_30, %c0_31] : memref<8x8x128xf32, #tpu.memory_space<vmem>>, vector<1x8x128xf32>
    %41 = vector.shape_cast %40 : vector<1x8x128xf32> to vector<8x128xf32>
    %42 = vector.shape_cast %38 : vector<8x128xf32> to vector<1x8x128xf32>
    tpu.vector_store %arg14[%39, %c0_30, %c0_31], %42 {strides = array<i32>} : memref<8x8x128xf32, #tpu.memory_space<vmem>>, vector<1x8x128xf32>,
    %c1_i32 = arith.constant 1 : i32
    %43 = arith.index_cast %c1_i32 : i32 to index
    %c0_32 = arith.constant 0 : index
    %c0_33 = arith.constant 0 : index
    %44 = vector.load %arg14[%43, %c0_32, %c0_33] : memref<8x8x128xf32, #tpu.memory_space<vmem>>, vector<1x8x128xf32>
    %45 = vector.shape_cast %44 : vector<1x8x128xf32> to vector<8x128xf32>
    %46 = arith.index_cast %c1_i32 : i32 to index
    %c0_34 = arith.constant 0 : index
    %c0_35 = arith.constant 0 : index
    %47 = vector.load %arg15[%46, %c0_34, %c0_35] : memref<8x8x128xf32, #tpu.memory_space<vmem>>, vector<1x8x128xf32>
    %48 = vector.shape_cast %47 : vector<1x8x128xf32> to vector<8x128xf32>
    %cst_36 = arith.constant dense<0.000000e+00> : vector<8x128xf32>
    %49 = tpu.matmul %38, %19, %cst_36 {dimension_numbers = #tpu.dot_dimension_numbers<[1], [0], [0], [1], [0, 0, 1, 1], [], []>} : vector<8x128xf32>, vector<128x128xf32>, vector<8x128xf32> -> vector<8x128xf32>
    %50 = arith.addf %49, %48 : vector<8x128xf32>
    %51 = arith.negf %50 : vector<8x128xf32>
    %52 = math.exp %51 : vector<8x128xf32>
    %cst_37 = arith.constant 1.000000e+00 : f32
    %53 = vector.broadcast %cst_37 : f32 to vector<8x128xf32>
    %54 = arith.addf %53, %52 : vector<8x128xf32>
    %55 = arith.divf %53, %54 : vector<8x128xf32>
    %56 = arith.mulf %55, %38 : vector<8x128xf32>
    %cst_38 = arith.constant 1.000000e+00 : f32
    %57 = vector.broadcast %cst_38 : f32 to vector<8x128xf32>
    %58 = arith.subf %57, %55 : vector<8x128xf32>
    %59 = arith.mulf %58, %45 : vector<8x128xf32>
    %60 = arith.addf %56, %59 : vector<8x128xf32>
    %61 = arith.index_cast %c1_i32 : i32 to index
    %c0_39 = arith.constant 0 : index
    %c0_40 = arith.constant 0 : index
    %62 = vector.load %arg14[%61, %c0_39, %c0_40] : memref<8x8x128xf32, #tpu.memory_space<vmem>>, vector<1x8x128xf32>
    %63 = vector.shape_cast %62 : vector<1x8x128xf32> to vector<8x128xf32>
    %64 = vector.shape_cast %60 : vector<8x128xf32> to vector<1x8x128xf32>
    tpu.vector_store %arg14[%61, %c0_39, %c0_40], %64 {strides = array<i32>} : memref<8x8x128xf32, #tpu.memory_space<vmem>>, vector<1x8x128xf32>,
    %c2_i32 = arith.constant 2 : i32
    %65 = arith.index_cast %c2_i32 : i32 to index
    %c0_41 = arith.constant 0 : index
    %c0_42 = arith.constant 0 : index
    %66 = vector.load %arg14[%65, %c0_41, %c0_42] : memref<8x8x128xf32, #tpu.memory_space<vmem>>, vector<1x8x128xf32>
    %67 = vector.shape_cast %66 : vector<1x8x128xf32> to vector<8x128xf32>
    %68 = arith.index_cast %c2_i32 : i32 to index
    %c0_43 = arith.constant 0 : index
    %c0_44 = arith.constant 0 : index
    %69 = vector.load %arg15[%68, %c0_43, %c0_44] : memref<8x8x128xf32, #tpu.memory_space<vmem>>, vector<1x8x128xf32>
    %70 = vector.shape_cast %69 : vector<1x8x128xf32> to vector<8x128xf32>
    %cst_45 = arith.constant dense<0.000000e+00> : vector<8x128xf32>
    %71 = tpu.matmul %60, %19, %cst_45 {dimension_numbers = #tpu.dot_dimension_numbers<[1], [0], [0], [1], [0, 0, 1, 1], [], []>} : vector<8x128xf32>, vector<128x128xf32>, vector<8x128xf32> -> vector<8x128xf32>
    %72 = arith.addf %71, %70 : vector<8x128xf32>
    %73 = arith.negf %72 : vector<8x128xf32>
    %74 = math.exp %73 : vector<8x128xf32>
    %cst_46 = arith.constant 1.000000e+00 : f32
    %75 = vector.broadcast %cst_46 : f32 to vector<8x128xf32>
    %76 = arith.addf %75, %74 : vector<8x128xf32>
    %77 = arith.divf %75, %76 : vector<8x128xf32>
    %78 = arith.mulf %77, %60 : vector<8x128xf32>
    %cst_47 = arith.constant 1.000000e+00 : f32
    %79 = vector.broadcast %cst_47 : f32 to vector<8x128xf32>
    %80 = arith.subf %79, %77 : vector<8x128xf32>
    %81 = arith.mulf %80, %67 : vector<8x128xf32>
    %82 = arith.addf %78, %81 : vector<8x128xf32>
    %83 = arith.index_cast %c2_i32 : i32 to index
    %c0_48 = arith.constant 0 : index
    %c0_49 = arith.constant 0 : index
    %84 = vector.load %arg14[%83, %c0_48, %c0_49] : memref<8x8x128xf32, #tpu.memory_space<vmem>>, vector<1x8x128xf32>
    %85 = vector.shape_cast %84 : vector<1x8x128xf32> to vector<8x128xf32>
    %86 = vector.shape_cast %82 : vector<8x128xf32> to vector<1x8x128xf32>
    tpu.vector_store %arg14[%83, %c0_48, %c0_49], %86 {strides = array<i32>} : memref<8x8x128xf32, #tpu.memory_space<vmem>>, vector<1x8x128xf32>,
    %c3_i32 = arith.constant 3 : i32
    %87 = arith.index_cast %c3_i32 : i32 to index
    %c0_50 = arith.constant 0 : index
    %c0_51 = arith.constant 0 : index
    %88 = vector.load %arg14[%87, %c0_50, %c0_51] : memref<8x8x128xf32, #tpu.memory_space<vmem>>, vector<1x8x128xf32>
    %89 = vector.shape_cast %88 : vector<1x8x128xf32> to vector<8x128xf32>
    %90 = arith.index_cast %c3_i32 : i32 to index
    %c0_52 = arith.constant 0 : index
    %c0_53 = arith.constant 0 : index
    %91 = vector.load %arg15[%90, %c0_52, %c0_53] : memref<8x8x128xf32, #tpu.memory_space<vmem>>, vector<1x8x128xf32>
    %92 = vector.shape_cast %91 : vector<1x8x128xf32> to vector<8x128xf32>
    %cst_54 = arith.constant dense<0.000000e+00> : vector<8x128xf32>
    %93 = tpu.matmul %82, %19, %cst_54 {dimension_numbers = #tpu.dot_dimension_numbers<[1], [0], [0], [1], [0, 0, 1, 1], [], []>} : vector<8x128xf32>, vector<128x128xf32>, vector<8x128xf32> -> vector<8x128xf32>
    %94 = arith.addf %93, %92 : vector<8x128xf32>
    %95 = arith.negf %94 : vector<8x128xf32>
    %96 = math.exp %95 : vector<8x128xf32>
    %cst_55 = arith.constant 1.000000e+00 : f32
    %97 = vector.broadcast %cst_55 : f32 to vector<8x128xf32>
    %98 = arith.addf %97, %96 : vector<8x128xf32>
    %99 = arith.divf %97, %98 : vector<8x128xf32>
    %100 = arith.mulf %99, %82 : vector<8x128xf32>
    %cst_56 = arith.constant 1.000000e+00 : f32
    %101 = vector.broadcast %cst_56 : f32 to vector<8x128xf32>
    %102 = arith.subf %101, %99 : vector<8x128xf32>
    %103 = arith.mulf %102, %89 : vector<8x128xf32>
    %104 = arith.addf %100, %103 : vector<8x128xf32>
    %105 = arith.index_cast %c3_i32 : i32 to index
    %c0_57 = arith.constant 0 : index
    %c0_58 = arith.constant 0 : index
    %106 = vector.load %arg14[%105, %c0_57, %c0_58] : memref<8x8x128xf32, #tpu.memory_space<vmem>>, vector<1x8x128xf32>
    %107 = vector.shape_cast %106 : vector<1x8x128xf32> to vector<8x128xf32>
    %108 = vector.shape_cast %104 : vector<8x128xf32> to vector<1x8x128xf32>
    tpu.vector_store %arg14[%105, %c0_57, %c0_58], %108 {strides = array<i32>} : memref<8x8x128xf32, #tpu.memory_space<vmem>>, vector<1x8x128xf32>,
    %c4_i32 = arith.constant 4 : i32
    %109 = arith.index_cast %c4_i32 : i32 to index
    %c0_59 = arith.constant 0 : index
    %c0_60 = arith.constant 0 : index
    %110 = vector.load %arg14[%109, %c0_59, %c0_60] : memref<8x8x128xf32, #tpu.memory_space<vmem>>, vector<1x8x128xf32>
    %111 = vector.shape_cast %110 : vector<1x8x128xf32> to vector<8x128xf32>
    %112 = arith.index_cast %c4_i32 : i32 to index
    %c0_61 = arith.constant 0 : index
    %c0_62 = arith.constant 0 : index
    %113 = vector.load %arg15[%112, %c0_61, %c0_62] : memref<8x8x128xf32, #tpu.memory_space<vmem>>, vector<1x8x128xf32>
    %114 = vector.shape_cast %113 : vector<1x8x128xf32> to vector<8x128xf32>
    %cst_63 = arith.constant dense<0.000000e+00> : vector<8x128xf32>
    %115 = tpu.matmul %104, %19, %cst_63 {dimension_numbers = #tpu.dot_dimension_numbers<[1], [0], [0], [1], [0, 0, 1, 1], [], []>} : vector<8x128xf32>, vector<128x128xf32>, vector<8x128xf32> -> vector<8x128xf32>
    %116 = arith.addf %115, %114 : vector<8x128xf32>
    %117 = arith.negf %116 : vector<8x128xf32>
    %118 = math.exp %117 : vector<8x128xf32>
    %cst_64 = arith.constant 1.000000e+00 : f32
    %119 = vector.broadcast %cst_64 : f32 to vector<8x128xf32>
    %120 = arith.addf %119, %118 : vector<8x128xf32>
    %121 = arith.divf %119, %120 : vector<8x128xf32>
    %122 = arith.mulf %121, %104 : vector<8x128xf32>
    %cst_65 = arith.constant 1.000000e+00 : f32
    %123 = vector.broadcast %cst_65 : f32 to vector<8x128xf32>
    %124 = arith.subf %123, %121 : vector<8x128xf32>
    %125 = arith.mulf %124, %111 : vector<8x128xf32>
    %126 = arith.addf %122, %125 : vector<8x128xf32>
    %127 = arith.index_cast %c4_i32 : i32 to index
    %c0_66 = arith.constant 0 : index
    %c0_67 = arith.constant 0 : index
    %128 = vector.load %arg14[%127, %c0_66, %c0_67] : memref<8x8x128xf32, #tpu.memory_space<vmem>>, vector<1x8x128xf32>
    %129 = vector.shape_cast %128 : vector<1x8x128xf32> to vector<8x128xf32>
    %130 = vector.shape_cast %126 : vector<8x128xf32> to vector<1x8x128xf32>
    tpu.vector_store %arg14[%127, %c0_66, %c0_67], %130 {strides = array<i32>} : memref<8x8x128xf32, #tpu.memory_space<vmem>>, vector<1x8x128xf32>,
    %c5_i32 = arith.constant 5 : i32
    %131 = arith.index_cast %c5_i32 : i32 to index
    %c0_68 = arith.constant 0 : index
    %c0_69 = arith.constant 0 : index
    %132 = vector.load %arg14[%131, %c0_68, %c0_69] : memref<8x8x128xf32, #tpu.memory_space<vmem>>, vector<1x8x128xf32>
    %133 = vector.shape_cast %132 : vector<1x8x128xf32> to vector<8x128xf32>
    %134 = arith.index_cast %c5_i32 : i32 to index
    %c0_70 = arith.constant 0 : index
    %c0_71 = arith.constant 0 : index
    %135 = vector.load %arg15[%134, %c0_70, %c0_71] : memref<8x8x128xf32, #tpu.memory_space<vmem>>, vector<1x8x128xf32>
    %136 = vector.shape_cast %135 : vector<1x8x128xf32> to vector<8x128xf32>
    %cst_72 = arith.constant dense<0.000000e+00> : vector<8x128xf32>
    %137 = tpu.matmul %126, %19, %cst_72 {dimension_numbers = #tpu.dot_dimension_numbers<[1], [0], [0], [1], [0, 0, 1, 1], [], []>} : vector<8x128xf32>, vector<128x128xf32>, vector<8x128xf32> -> vector<8x128xf32>
    %138 = arith.addf %137, %136 : vector<8x128xf32>
    %139 = arith.negf %138 : vector<8x128xf32>
    %140 = math.exp %139 : vector<8x128xf32>
    %cst_73 = arith.constant 1.000000e+00 : f32
    %141 = vector.broadcast %cst_73 : f32 to vector<8x128xf32>
    %142 = arith.addf %141, %140 : vector<8x128xf32>
    %143 = arith.divf %141, %142 : vector<8x128xf32>
    %144 = arith.mulf %143, %126 : vector<8x128xf32>
    %cst_74 = arith.constant 1.000000e+00 : f32
    %145 = vector.broadcast %cst_74 : f32 to vector<8x128xf32>
    %146 = arith.subf %145, %143 : vector<8x128xf32>
    %147 = arith.mulf %146, %133 : vector<8x128xf32>
    %148 = arith.addf %144, %147 : vector<8x128xf32>
    %149 = arith.index_cast %c5_i32 : i32 to index
    %c0_75 = arith.constant 0 : index
    %c0_76 = arith.constant 0 : index
    %150 = vector.load %arg14[%149, %c0_75, %c0_76] : memref<8x8x128xf32, #tpu.memory_space<vmem>>, vector<1x8x128xf32>
    %151 = vector.shape_cast %150 : vector<1x8x128xf32> to vector<8x128xf32>
    %152 = vector.shape_cast %148 : vector<8x128xf32> to vector<1x8x128xf32>
    tpu.vector_store %arg14[%149, %c0_75, %c0_76], %152 {strides = array<i32>} : memref<8x8x128xf32, #tpu.memory_space<vmem>>, vector<1x8x128xf32>,
    %c6_i32 = arith.constant 6 : i32
    %153 = arith.index_cast %c6_i32 : i32 to index
    %c0_77 = arith.constant 0 : index
    %c0_78 = arith.constant 0 : index
    %154 = vector.load %arg14[%153, %c0_77, %c0_78] : memref<8x8x128xf32, #tpu.memory_space<vmem>>, vector<1x8x128xf32>
    %155 = vector.shape_cast %154 : vector<1x8x128xf32> to vector<8x128xf32>
    %156 = arith.index_cast %c6_i32 : i32 to index
    %c0_79 = arith.constant 0 : index
    %c0_80 = arith.constant 0 : index
    %157 = vector.load %arg15[%156, %c0_79, %c0_80] : memref<8x8x128xf32, #tpu.memory_space<vmem>>, vector<1x8x128xf32>
    %158 = vector.shape_cast %157 : vector<1x8x128xf32> to vector<8x128xf32>
    %cst_81 = arith.constant dense<0.000000e+00> : vector<8x128xf32>
    %159 = tpu.matmul %148, %19, %cst_81 {dimension_numbers = #tpu.dot_dimension_numbers<[1], [0], [0], [1], [0, 0, 1, 1], [], []>} : vector<8x128xf32>, vector<128x128xf32>, vector<8x128xf32> -> vector<8x128xf32>
    %160 = arith.addf %159, %158 : vector<8x128xf32>
    %161 = arith.negf %160 : vector<8x128xf32>
    %162 = math.exp %161 : vector<8x128xf32>
    %cst_82 = arith.constant 1.000000e+00 : f32
    %163 = vector.broadcast %cst_82 : f32 to vector<8x128xf32>
    %164 = arith.addf %163, %162 : vector<8x128xf32>
    %165 = arith.divf %163, %164 : vector<8x128xf32>
    %166 = arith.mulf %165, %148 : vector<8x128xf32>
    %cst_83 = arith.constant 1.000000e+00 : f32
    %167 = vector.broadcast %cst_83 : f32 to vector<8x128xf32>
    %168 = arith.subf %167, %165 : vector<8x128xf32>
    %169 = arith.mulf %168, %155 : vector<8x128xf32>
    %170 = arith.addf %166, %169 : vector<8x128xf32>
    %171 = arith.index_cast %c6_i32 : i32 to index
    %c0_84 = arith.constant 0 : index
    %c0_85 = arith.constant 0 : index
    %172 = vector.load %arg14[%171, %c0_84, %c0_85] : memref<8x8x128xf32, #tpu.memory_space<vmem>>, vector<1x8x128xf32>
    %173 = vector.shape_cast %172 : vector<1x8x128xf32> to vector<8x128xf32>
    %174 = vector.shape_cast %170 : vector<8x128xf32> to vector<1x8x128xf32>
    tpu.vector_store %arg14[%171, %c0_84, %c0_85], %174 {strides = array<i32>} : memref<8x8x128xf32, #tpu.memory_space<vmem>>, vector<1x8x128xf32>,
    %c7_i32 = arith.constant 7 : i32
    %175 = arith.index_cast %c7_i32 : i32 to index
    %c0_86 = arith.constant 0 : index
    %c0_87 = arith.constant 0 : index
    %176 = vector.load %arg14[%175, %c0_86, %c0_87] : memref<8x8x128xf32, #tpu.memory_space<vmem>>, vector<1x8x128xf32>
    %177 = vector.shape_cast %176 : vector<1x8x128xf32> to vector<8x128xf32>
    %178 = arith.index_cast %c7_i32 : i32 to index
    %c0_88 = arith.constant 0 : index
    %c0_89 = arith.constant 0 : index
    %179 = vector.load %arg15[%178, %c0_88, %c0_89] : memref<8x8x128xf32, #tpu.memory_space<vmem>>, vector<1x8x128xf32>
    %180 = vector.shape_cast %179 : vector<1x8x128xf32> to vector<8x128xf32>
    %cst_90 = arith.constant dense<0.000000e+00> : vector<8x128xf32>
    %181 = tpu.matmul %170, %19, %cst_90 {dimension_numbers = #tpu.dot_dimension_numbers<[1], [0], [0], [1], [0, 0, 1, 1], [], []>} : vector<8x128xf32>, vector<128x128xf32>, vector<8x128xf32> -> vector<8x128xf32>
    %182 = arith.addf %181, %180 : vector<8x128xf32>
    %183 = arith.negf %182 : vector<8x128xf32>
    %184 = math.exp %183 : vector<8x128xf32>
    %cst_91 = arith.constant 1.000000e+00 : f32
    %185 = vector.broadcast %cst_91 : f32 to vector<8x128xf32>
    %186 = arith.addf %185, %184 : vector<8x128xf32>
    %187 = arith.divf %185, %186 : vector<8x128xf32>
    %188 = arith.mulf %187, %170 : vector<8x128xf32>
    %cst_92 = arith.constant 1.000000e+00 : f32
    %189 = vector.broadcast %cst_92 : f32 to vector<8x128xf32>
    %190 = arith.subf %189, %187 : vector<8x128xf32>
    %191 = arith.mulf %190, %177 : vector<8x128xf32>
    %192 = arith.addf %188, %191 : vector<8x128xf32>
    %193 = arith.index_cast %c7_i32 : i32 to index
    %c0_93 = arith.constant 0 : index
    %c0_94 = arith.constant 0 : index
    %194 = vector.load %arg14[%193, %c0_93, %c0_94] : memref<8x8x128xf32, #tpu.memory_space<vmem>>, vector<1x8x128xf32>
    %195 = vector.shape_cast %194 : vector<1x8x128xf32> to vector<8x128xf32>
    %196 = vector.shape_cast %192 : vector<8x128xf32> to vector<1x8x128xf32>
    tpu.vector_store %arg14[%193, %c0_93, %c0_94], %196 {strides = array<i32>} : memref<8x8x128xf32, #tpu.memory_space<vmem>>, vector<1x8x128xf32>,
    %c8_i32 = arith.constant 8 : i32
    %c0_95 = arith.constant 0 : index
    %c0_96 = arith.constant 0 : index
    %197 = vector.load %arg13[%c0_95, %c0_96] : memref<8x128xf32, #tpu.memory_space<vmem>>, vector<8x128xf32>
    tpu.vector_store %arg13[%c0_95, %c0_96], %192 {strides = array<i32>} : memref<8x128xf32, #tpu.memory_space<vmem>>, vector<8x128xf32>,
    %c0_97 = arith.constant 0 : index
    %c0_98 = arith.constant 0 : index
    %c0_99 = arith.constant 0 : index
    %198 = vector.load %arg14[%c0_97, %c0_98, %c0_99] : memref<8x8x128xf32, #tpu.memory_space<vmem>>, vector<8x8x128xf32>
    %199 = vector.shape_cast %198 : vector<8x8x128xf32> to vector<64x128xf32>
    %c0_100 = arith.constant 0 : index
    %c0_101 = arith.constant 0 : index
    %200 = vector.load %arg8[%c0_100, %c0_101] : memref<128x128xf32, #tpu.memory_space<vmem>>, vector<128x128xf32>
    %cst_102 = arith.constant dense<0.000000e+00> : vector<64x128xf32>
    %201 = tpu.matmul %199, %200, %cst_102 {dimension_numbers = #tpu.dot_dimension_numbers<[1], [0], [0], [1], [0, 0, 1, 1], [], []>} : vector<64x128xf32>, vector<128x128xf32>, vector<64x128xf32> -> vector<64x128xf32>
    %c0_103 = arith.constant 0 : index
    %c0_104 = arith.constant 0 : index
    %202 = vector.load %arg9[%c0_103, %c0_104] : memref<1x128xf32, #tpu.memory_space<vmem>>, vector<1x128xf32>
    %203 = vector.broadcast %202 : vector<1x128xf32> to vector<64x128xf32>
    %204 = arith.addf %201, %203 : vector<64x128xf32>
    %205 = vector.shape_cast %204 : vector<64x128xf32> to vector<8x8x128xf32>
    %c0_105 = arith.constant 0 : index
    %c0_106 = arith.constant 0 : index
    %c0_107 = arith.constant 0 : index
    %206 = vector.load %arg11[%c0_105, %c0_106, %c0_107] : memref<8x8x128xf32, #tpu.memory_space<vmem>>, vector<8x8x128xf32>
    tpu.vector_store %arg11[%c0_105, %c0_106, %c0_107], %205 {strides = array<i32>} : memref<8x8x128xf32, #tpu.memory_space<vmem>>, vector<8x8x128xf32>,
    %c0_i32_108 = arith.constant 0 : i32
    %207 = arith.cmpi eq, %arg1, %c0_i32_108 : i32
    %208 = arith.extui %207 : i1 to i32
    %c0_i32_109 = arith.constant 0 : i32
    %209 = arith.cmpi ne, %208, %c0_i32_109 : i32
    scf.if %209 {
      %c0_110 = arith.constant 0 : index
      %c0_111 = arith.constant 0 : index
      %210 = vector.load %arg12[%c0_110, %c0_111] : memref<8x128xf32, #tpu.memory_space<vmem>>, vector<8x128xf32>
      tpu.vector_store %arg12[%c0_110, %c0_111], %192 {strides = array<i32>} : memref<8x128xf32, #tpu.memory_space<vmem>>, vector<8x128xf32>,
    } else {
    }
    return
  }
  func.func @transform_0(%arg0: i32, %arg1: i32) -> (i32, i32, i32) {
    %c0_i32 = arith.constant 0 : i32
    %c0_i32_0 = arith.constant 0 : i32
    return %arg1, %arg0, %c0_i32 : i32, i32, i32
  }
  func.func @transform_1(%arg0: i32, %arg1: i32) -> (i32, i32) {
    %c0_i32 = arith.constant 0 : i32
    %c0_i32_0 = arith.constant 0 : i32
    %c0_i32_1 = arith.constant 0 : i32
    return %c0_i32, %c0_i32_0 : i32, i32
  }
  func.func @transform_2(%arg0: i32, %arg1: i32) -> (i32, i32) {
    %c0_i32 = arith.constant 0 : i32
    %c0_i32_0 = arith.constant 0 : i32
    %c0_i32_1 = arith.constant 0 : i32
    return %c0_i32, %c0_i32_0 : i32, i32
  }
  func.func @transform_3(%arg0: i32, %arg1: i32) -> (i32, i32) {
    %c0_i32 = arith.constant 0 : i32
    %c0_i32_0 = arith.constant 0 : i32
    %c0_i32_1 = arith.constant 0 : i32
    return %c0_i32, %c0_i32_0 : i32, i32
  }
  func.func @transform_4(%arg0: i32, %arg1: i32) -> (i32, i32) {
    %c0_i32 = arith.constant 0 : i32
    %c0_i32_0 = arith.constant 0 : i32
    %c0_i32_1 = arith.constant 0 : i32
    return %c0_i32, %c0_i32_0 : i32, i32
  }
  func.func @transform_5(%arg0: i32, %arg1: i32) -> (i32, i32) {
    %c0_i32 = arith.constant 0 : i32
    %c0_i32_0 = arith.constant 0 : i32
    %c0_i32_1 = arith.constant 0 : i32
    return %c0_i32, %c0_i32_0 : i32, i32
  }
  func.func @transform_6(%arg0: i32, %arg1: i32) -> (i32, i32) {
    %c0_i32 = arith.constant 0 : i32
    %c0_i32_0 = arith.constant 0 : i32
    %c0_i32_1 = arith.constant 0 : i32
    return %c0_i32, %c0_i32_0 : i32, i32
  }
  func.func @transform_7(%arg0: i32, %arg1: i32) -> (i32, i32) {
    %c0_i32 = arith.constant 0 : i32
    %c0_i32_0 = arith.constant 0 : i32
    %c0_i32_1 = arith.constant 0 : i32
    return %c0_i32, %c0_i32_0 : i32, i32
  }
  func.func @transform_8(%arg0: i32, %arg1: i32) -> (i32, i32) {
    %c0_i32 = arith.constant 0 : i32
    %c0_i32_0 = arith.constant 0 : i32
    return %arg0, %c0_i32 : i32, i32
  }
  func.func @transform_9(%arg0: i32, %arg1: i32) -> (i32, i32, i32) {
    %c0_i32 = arith.constant 0 : i32
    %c0_i32_0 = arith.constant 0 : i32
    return %arg1, %arg0, %c0_i32 : i32, i32, i32
  }
  func.func @transform_10(%arg0: i32, %arg1: i32) -> (i32, i32) {
    %c0_i32 = arith.constant 0 : i32
    %c0_i32_0 = arith.constant 0 : i32
    return %arg0, %c0_i32 : i32, i32
  }
}

module attributes {stable_mosaic.version = 11 : i64} {
  func.func @_minimal_rnn_cell_kernel(%arg0: i32, %arg1: i32, %arg2: memref<8x8x128xf32, #tpu.memory_space<vmem>>, %arg3: memref<128x128xf32, #tpu.memory_space<vmem>>, %arg4: memref<1x128xf32, #tpu.memory_space<vmem>>, %arg5: memref<128x128xf32, #tpu.memory_space<vmem>>, %arg6: memref<1x128xf32, #tpu.memory_space<vmem>>, %arg7: memref<128x128xf32, #tpu.memory_space<vmem>>, %arg8: memref<128x128xf32, #tpu.memory_space<vmem>>, %arg9: memref<1x128xf32, #tpu.memory_space<vmem>>, %arg10: memref<8x128xf32, #tpu.memory_space<vmem>>, %arg11: memref<8x8x128xf32, #tpu.memory_space<vmem>>, %arg12: memref<8x128xf32, #tpu.memory_space<vmem>>, %arg13: memref<8x128xf32, #tpu.memory_space<vmem>>, %arg14: memref<8x8x128xf32, #tpu.memory_space<vmem>>, %arg15: memref<8x8x128xf32, #tpu.memory_space<vmem>>) attributes {dimension_semantics = [#tpu.dimension_semantics<parallel>, #tpu.dimension_semantics<arbitrary>], iteration_bounds = array<i64: 1, 1>, scalar_prefetch = 0 : i64, scratch_operands = 3 : i64, tpu.core_type = #tpu.core_type<tc>, window_params = [{transform_indices = @transform_0, window_bounds = array<i64: 8, 8, 128>}, {pipeline_mode = #tpu.pipeline_mode<synchronous>, transform_indices = @transform_1, window_bounds = array<i64: 128, 128>}, {pipeline_mode = #tpu.pipeline_mode<synchronous>, transform_indices = @transform_2, window_bounds = array<i64: 1, 128>}, {pipeline_mode = #tpu.pipeline_mode<synchronous>, transform_indices = @transform_3, window_bounds = array<i64: 128, 128>}, {pipeline_mode = #tpu.pipeline_mode<synchronous>, transform_indices = @transform_4, window_bounds = array<i64: 1, 128>}, {pipeline_mode = #tpu.pipeline_mode<synchronous>, transform_indices = @transform_5, window_bounds = array<i64: 128, 128>}, {pipeline_mode = #tpu.pipeline_mode<synchronous>, transform_indices = @transform_6, window_bounds = array<i64: 128, 128>}, {pipeline_mode = #tpu.pipeline_mode<synchronous>, transform_indices = @transform_7, window_bounds = array<i64: 1, 128>}, {transform_indices = @transform_8, window_bounds = array<i64: 8, 128>}, {transform_indices = @transform_9, window_bounds = array<i64: 8, 8, 128>}, {transform_indices = @transform_10, window_bounds = array<i64: 8, 128>}]} {
    %c0_i32 = arith.constant 0 : i32
    %0 = arith.cmpi eq, %arg1, %c0_i32 : i32
    %1 = arith.extui %0 : i1 to i32
    %c0_i32_0 = arith.constant 0 : i32
    %2 = arith.cmpi ne, %1, %c0_i32_0 : i32
    scf.if %2 {
      %c0_110 = arith.constant 0 : index
      %c0_111 = arith.constant 0 : index
      %210 = vector.load %arg10[%c0_110, %c0_111] : memref<8x128xf32, #tpu.memory_space<vmem>>, vector<8x128xf32>
      %c0_112 = arith.constant 0 : index
      %c0_113 = arith.constant 0 : index
      %211 = vector.load %arg13[%c0_112, %c0_113] : memref<8x128xf32, #tpu.memory_space<vmem>>, vector<8x128xf32>
      tpu.vector_store %arg13[%c0_112, %c0_113], %210 {strides = array<i32>} : memref<8x128xf32, #tpu.memory_space<vmem>>, vector<8x128xf32>,
    } else {
    }
    %c0 = arith.constant 0 : index
    %c0_1 = arith.constant 0 : index
    %c0_2 = arith.constant 0 : index
    %3 = vector.load %arg2[%c0, %c0_1, %c0_2] : memref<8x8x128xf32, #tpu.memory_space<vmem>>, vector<8x8x128xf32>
    %4 = vector.shape_cast %3 : vector<8x8x128xf32> to vector<64x128xf32>
    %c0_3 = arith.constant 0 : index
    %c0_4 = arith.constant 0 : index
    %5 = vector.load %arg3[%c0_3, %c0_4] : memref<128x128xf32, #tpu.memory_space<vmem>>, vector<128x128xf32>
    %cst = arith.constant dense<0.000000e+00> : vector<64x128xf32>
    %6 = tpu.matmul %4, %5, %cst {dimension_numbers = #tpu.dot_dimension_numbers<[1], [0], [0], [1], [0, 0, 1, 1], [], []>} : vector<64x128xf32>, vector<128x128xf32>, vector<64x128xf32> -> vector<64x128xf32>
    %c0_5 = arith.constant 0 : index
    %c0_6 = arith.constant 0 : index
    %7 = vector.load %arg4[%c0_5, %c0_6] : memref<1x128xf32, #tpu.memory_space<vmem>>, vector<1x128xf32>
    %8 = vector.broadcast %7 : vector<1x128xf32> to vector<64x128xf32>
    %9 = arith.addf %6, %8 : vector<64x128xf32>
    %c0_7 = arith.constant 0 : index
    %c0_8 = arith.constant 0 : index
    %10 = vector.load %arg5[%c0_7, %c0_8] : memref<128x128xf32, #tpu.memory_space<vmem>>, vector<128x128xf32>
    %cst_9 = arith.constant dense<0.000000e+00> : vector<64x128xf32>
    %11 = tpu.matmul %4, %10, %cst_9 {dimension_numbers = #tpu.dot_dimension_numbers<[1], [0], [0], [1], [0, 0, 1, 1], [], []>} : vector<64x128xf32>, vector<128x128xf32>, vector<64x128xf32> -> vector<64x128xf32>
    %c0_10 = arith.constant 0 : index
    %c0_11 = arith.constant 0 : index
    %12 = vector.load %arg6[%c0_10, %c0_11] : memref<1x128xf32, #tpu.memory_space<vmem>>, vector<1x128xf32>
    %13 = vector.broadcast %12 : vector<1x128xf32> to vector<64x128xf32>
    %14 = arith.addf %11, %13 : vector<64x128xf32>
    %15 = vector.shape_cast %9 : vector<64x128xf32> to vector<8x8x128xf32>
    %c0_12 = arith.constant 0 : index
    %c0_13 = arith.constant 0 : index
    %c0_14 = arith.constant 0 : index
    %16 = vector.load %arg14[%c0_12, %c0_13, %c0_14] : memref<8x8x128xf32, #tpu.memory_space<vmem>>, vector<8x8x128xf32>
    tpu.vector_store %arg14[%c0_12, %c0_13, %c0_14], %15 {strides = array<i32>} : memref<8x8x128xf32, #tpu.memory_space<vmem>>, vector<8x8x128xf32>,
    %17 = vector.shape_cast %14 : vector<64x128xf32> to vector<8x8x128xf32>
    %c0_15 = arith.constant 0 : index
    %c0_16 = arith.constant 0 : index
    %c0_17 = arith.constant 0 : index
    %18 = vector.load %arg15[%c0_15, %c0_16, %c0_17] : memref<8x8x128xf32, #tpu.memory_space<vmem>>, vector<8x8x128xf32>
    tpu.vector_store %arg15[%c0_15, %c0_16, %c0_17], %17 {strides = array<i32>} : memref<8x8x128xf32, #tpu.memory_space<vmem>>, vector<8x8x128xf32>,
    %c0_18 = arith.constant 0 : index
    %c0_19 = arith.constant 0 : index
    %19 = vector.load %arg7[%c0_18, %c0_19] : memref<128x128xf32, #tpu.memory_space<vmem>>, vector<128x128xf32>
    %c0_20 = arith.constant 0 : index
    %c0_21 = arith.constant 0 : index
    %20 = vector.load %arg13[%c0_20, %c0_21] : memref<8x128xf32, #tpu.memory_space<vmem>>, vector<8x128xf32>
    %c0_i32_22 = arith.constant 0 : i32
    %21 = arith.index_cast %c0_i32_22 : i32 to index
    %c0_23 = arith.constant 0 : index
    %c0_24 = arith.constant 0 : index
    %22 = vector.load %arg14[%21, %c0_23, %c0_24] : memref<8x8x128xf32, #tpu.memory_space<vmem>>, vector<1x8x128xf32>
    %23 = vector.shape_cast %22 : vector<1x8x128xf32> to vector<8x128xf32>
    %24 = arith.index_cast %c0_i32_22 : i32 to index
    %c0_25 = arith.constant 0 : index
    %c0_26 = arith.constant 0 : index
    %25 = vector.load %arg15[%24, %c0_25, %c0_26] : memref<8x8x128xf32, #tpu.memory_space<vmem>>, vector<1x8x128xf32>
    %26 = vector.shape_cast %25 : vector<1x8x128xf32> to vector<8x128xf32>
    %cst_27 = arith.constant dense<0.000000e+00> : vector<8x128xf32>
    %27 = tpu.matmul %20, %19, %cst_27 {dimension_numbers = #tpu.dot_dimension_numbers<[1], [0], [0], [1], [0, 0, 1, 1], [], []>} : vector<8x128xf32>, vector<128x128xf32>, vector<8x128xf32> -> vector<8x128xf32>
    %28 = arith.addf %27, %26 : vector<8x128xf32>
    %29 = arith.negf %28 : vector<8x128xf32>
    %30 = math.exp %29 : vector<8x128xf32>
    %cst_28 = arith.constant 1.000000e+00 : f32
    %31 = vector.broadcast %cst_28 : f32 to vector<8x128xf32>
    %32 = arith.addf %31, %30 : vector<8x128xf32>
    %33 = arith.divf %31, %32 : vector<8x128xf32>
    %34 = arith.mulf %33, %20 : vector<8x128xf32>
    %cst_29 = arith.constant 1.000000e+00 : f32
    %35 = vector.broadcast %cst_29 : f32 to vector<8x128xf32>
    %36 = arith.subf %35, %33 : vector<8x128xf32>
    %37 = arith.mulf %36, %23 : vector<8x128xf32>
    %38 = arith.addf %34, %37 : vector<8x128xf32>
    %39 = arith.index_cast %c0_i32_22 : i32 to index
    %c0_30 = arith.constant 0 : index
    %c0_31 = arith.constant 0 : index
    %40 = vector.load %arg14[%39, %c0_30, %c0_31] : memref<8x8x128xf32, #tpu.memory_space<vmem>>, vector<1x8x128xf32>
    %41 = vector.shape_cast %40 : vector<1x8x128xf32> to vector<8x128xf32>
    %42 = vector.shape_cast %38 : vector<8x128xf32> to vector<1x8x128xf32>
    tpu.vector_store %arg14[%39, %c0_30, %c0_31], %42 {strides = array<i32>} : memref<8x8x128xf32, #tpu.memory_space<vmem>>, vector<1x8x128xf32>,
    %c1_i32 = arith.constant 1 : i32
    %43 = arith.index_cast %c1_i32 : i32 to index
    %c0_32 = arith.constant 0 : index
    %c0_33 = arith.constant 0 : index
    %44 = vector.load %arg14[%43, %c0_32, %c0_33] : memref<8x8x128xf32, #tpu.memory_space<vmem>>, vector<1x8x128xf32>
    %45 = vector.shape_cast %44 : vector<1x8x128xf32> to vector<8x128xf32>
    %46 = arith.index_cast %c1_i32 : i32 to index
    %c0_34 = arith.constant 0 : index
    %c0_35 = arith.constant 0 : index
    %47 = vector.load %arg15[%46, %c0_34, %c0_35] : memref<8x8x128xf32, #tpu.memory_space<vmem>>, vector<1x8x128xf32>
    %48 = vector.shape_cast %47 : vector<1x8x128xf32> to vector<8x128xf32>
    %cst_36 = arith.constant dense<0.000000e+00> : vector<8x128xf32>
    %49 = tpu.matmul %38, %19, %cst_36 {dimension_numbers = #tpu.dot_dimension_numbers<[1], [0], [0], [1], [0, 0, 1, 1], [], []>} : vector<8x128xf32>, vector<128x128xf32>, vector<8x128xf32> -> vector<8x128xf32>
    %50 = arith.addf %49, %48 : vector<8x128xf32>
    %51 = arith.negf %50 : vector<8x128xf32>
    %52 = math.exp %51 : vector<8x128xf32>
    %cst_37 = arith.constant 1.000000e+00 : f32
    %53 = vector.broadcast %cst_37 : f32 to vector<8x128xf32>
    %54 = arith.addf %53, %52 : vector<8x128xf32>
    %55 = arith.divf %53, %54 : vector<8x128xf32>
    %56 = arith.mulf %55, %38 : vector<8x128xf32>
    %cst_38 = arith.constant 1.000000e+00 : f32
    %57 = vector.broadcast %cst_38 : f32 to vector<8x128xf32>
    %58 = arith.subf %57, %55 : vector<8x128xf32>
    %59 = arith.mulf %58, %45 : vector<8x128xf32>
    %60 = arith.addf %56, %59 : vector<8x128xf32>
    %61 = arith.index_cast %c1_i32 : i32 to index
    %c0_39 = arith.constant 0 : index
    %c0_40 = arith.constant 0 : index
    %62 = vector.load %arg14[%61, %c0_39, %c0_40] : memref<8x8x128xf32, #tpu.memory_space<vmem>>, vector<1x8x128xf32>
    %63 = vector.shape_cast %62 : vector<1x8x128xf32> to vector<8x128xf32>
    %64 = vector.shape_cast %60 : vector<8x128xf32> to vector<1x8x128xf32>
    tpu.vector_store %arg14[%61, %c0_39, %c0_40], %64 {strides = array<i32>} : memref<8x8x128xf32, #tpu.memory_space<vmem>>, vector<1x8x128xf32>,
    %c2_i32 = arith.constant 2 : i32
    %65 = arith.index_cast %c2_i32 : i32 to index
    %c0_41 = arith.constant 0 : index
    %c0_42 = arith.constant 0 : index
    %66 = vector.load %arg14[%65, %c0_41, %c0_42] : memref<8x8x128xf32, #tpu.memory_space<vmem>>, vector<1x8x128xf32>
    %67 = vector.shape_cast %66 : vector<1x8x128xf32> to vector<8x128xf32>
    %68 = arith.index_cast %c2_i32 : i32 to index
    %c0_43 = arith.constant 0 : index
    %c0_44 = arith.constant 0 : index
    %69 = vector.load %arg15[%68, %c0_43, %c0_44] : memref<8x8x128xf32, #tpu.memory_space<vmem>>, vector<1x8x128xf32>
    %70 = vector.shape_cast %69 : vector<1x8x128xf32> to vector<8x128xf32>
    %cst_45 = arith.constant dense<0.000000e+00> : vector<8x128xf32>
    %71 = tpu.matmul %60, %19, %cst_45 {dimension_numbers = #tpu.dot_dimension_numbers<[1], [0], [0], [1], [0, 0, 1, 1], [], []>} : vector<8x128xf32>, vector<128x128xf32>, vector<8x128xf32> -> vector<8x128xf32>
    %72 = arith.addf %71, %70 : vector<8x128xf32>
    %73 = arith.negf %72 : vector<8x128xf32>
    %74 = math.exp %73 : vector<8x128xf32>
    %cst_46 = arith.constant 1.000000e+00 : f32
    %75 = vector.broadcast %cst_46 : f32 to vector<8x128xf32>
    %76 = arith.addf %75, %74 : vector<8x128xf32>
    %77 = arith.divf %75, %76 : vector<8x128xf32>
    %78 = arith.mulf %77, %60 : vector<8x128xf32>
    %cst_47 = arith.constant 1.000000e+00 : f32
    %79 = vector.broadcast %cst_47 : f32 to vector<8x128xf32>
    %80 = arith.subf %79, %77 : vector<8x128xf32>
    %81 = arith.mulf %80, %67 : vector<8x128xf32>
    %82 = arith.addf %78, %81 : vector<8x128xf32>
    %83 = arith.index_cast %c2_i32 : i32 to index
    %c0_48 = arith.constant 0 : index
    %c0_49 = arith.constant 0 : index
    %84 = vector.load %arg14[%83, %c0_48, %c0_49] : memref<8x8x128xf32, #tpu.memory_space<vmem>>, vector<1x8x128xf32>
    %85 = vector.shape_cast %84 : vector<1x8x128xf32> to vector<8x128xf32>
    %86 = vector.shape_cast %82 : vector<8x128xf32> to vector<1x8x128xf32>
    tpu.vector_store %arg14[%83, %c0_48, %c0_49], %86 {strides = array<i32>} : memref<8x8x128xf32, #tpu.memory_space<vmem>>, vector<1x8x128xf32>,
    %c3_i32 = arith.constant 3 : i32
    %87 = arith.index_cast %c3_i32 : i32 to index
    %c0_50 = arith.constant 0 : index
    %c0_51 = arith.constant 0 : index
    %88 = vector.load %arg14[%87, %c0_50, %c0_51] : memref<8x8x128xf32, #tpu.memory_space<vmem>>, vector<1x8x128xf32>
    %89 = vector.shape_cast %88 : vector<1x8x128xf32> to vector<8x128xf32>
    %90 = arith.index_cast %c3_i32 : i32 to index
    %c0_52 = arith.constant 0 : index
    %c0_53 = arith.constant 0 : index
    %91 = vector.load %arg15[%90, %c0_52, %c0_53] : memref<8x8x128xf32, #tpu.memory_space<vmem>>, vector<1x8x128xf32>
    %92 = vector.shape_cast %91 : vector<1x8x128xf32> to vector<8x128xf32>
    %cst_54 = arith.constant dense<0.000000e+00> : vector<8x128xf32>
    %93 = tpu.matmul %82, %19, %cst_54 {dimension_numbers = #tpu.dot_dimension_numbers<[1], [0], [0], [1], [0, 0, 1, 1], [], []>} : vector<8x128xf32>, vector<128x128xf32>, vector<8x128xf32> -> vector<8x128xf32>
    %94 = arith.addf %93, %92 : vector<8x128xf32>
    %95 = arith.negf %94 : vector<8x128xf32>
    %96 = math.exp %95 : vector<8x128xf32>
    %cst_55 = arith.constant 1.000000e+00 : f32
    %97 = vector.broadcast %cst_55 : f32 to vector<8x128xf32>
    %98 = arith.addf %97, %96 : vector<8x128xf32>
    %99 = arith.divf %97, %98 : vector<8x128xf32>
    %100 = arith.mulf %99, %82 : vector<8x128xf32>
    %cst_56 = arith.constant 1.000000e+00 : f32
    %101 = vector.broadcast %cst_56 : f32 to vector<8x128xf32>
    %102 = arith.subf %101, %99 : vector<8x128xf32>
    %103 = arith.mulf %102, %89 : vector<8x128xf32>
    %104 = arith.addf %100, %103 : vector<8x128xf32>
    %105 = arith.index_cast %c3_i32 : i32 to index
    %c0_57 = arith.constant 0 : index
    %c0_58 = arith.constant 0 : index
    %106 = vector.load %arg14[%105, %c0_57, %c0_58] : memref<8x8x128xf32, #tpu.memory_space<vmem>>, vector<1x8x128xf32>
    %107 = vector.shape_cast %106 : vector<1x8x128xf32> to vector<8x128xf32>
    %108 = vector.shape_cast %104 : vector<8x128xf32> to vector<1x8x128xf32>
    tpu.vector_store %arg14[%105, %c0_57, %c0_58], %108 {strides = array<i32>} : memref<8x8x128xf32, #tpu.memory_space<vmem>>, vector<1x8x128xf32>,
    %c4_i32 = arith.constant 4 : i32
    %109 = arith.index_cast %c4_i32 : i32 to index
    %c0_59 = arith.constant 0 : index
    %c0_60 = arith.constant 0 : index
    %110 = vector.load %arg14[%109, %c0_59, %c0_60] : memref<8x8x128xf32, #tpu.memory_space<vmem>>, vector<1x8x128xf32>
    %111 = vector.shape_cast %110 : vector<1x8x128xf32> to vector<8x128xf32>
    %112 = arith.index_cast %c4_i32 : i32 to index
    %c0_61 = arith.constant 0 : index
    %c0_62 = arith.constant 0 : index
    %113 = vector.load %arg15[%112, %c0_61, %c0_62] : memref<8x8x128xf32, #tpu.memory_space<vmem>>, vector<1x8x128xf32>
    %114 = vector.shape_cast %113 : vector<1x8x128xf32> to vector<8x128xf32>
    %cst_63 = arith.constant dense<0.000000e+00> : vector<8x128xf32>
    %115 = tpu.matmul %104, %19, %cst_63 {dimension_numbers = #tpu.dot_dimension_numbers<[1], [0], [0], [1], [0, 0, 1, 1], [], []>} : vector<8x128xf32>, vector<128x128xf32>, vector<8x128xf32> -> vector<8x128xf32>
    %116 = arith.addf %115, %114 : vector<8x128xf32>
    %117 = arith.negf %116 : vector<8x128xf32>
    %118 = math.exp %117 : vector<8x128xf32>
    %cst_64 = arith.constant 1.000000e+00 : f32
    %119 = vector.broadcast %cst_64 : f32 to vector<8x128xf32>
    %120 = arith.addf %119, %118 : vector<8x128xf32>
    %121 = arith.divf %119, %120 : vector<8x128xf32>
    %122 = arith.mulf %121, %104 : vector<8x128xf32>
    %cst_65 = arith.constant 1.000000e+00 : f32
    %123 = vector.broadcast %cst_65 : f32 to vector<8x128xf32>
    %124 = arith.subf %123, %121 : vector<8x128xf32>
    %125 = arith.mulf %124, %111 : vector<8x128xf32>
    %126 = arith.addf %122, %125 : vector<8x128xf32>
    %127 = arith.index_cast %c4_i32 : i32 to index
    %c0_66 = arith.constant 0 : index
    %c0_67 = arith.constant 0 : index
    %128 = vector.load %arg14[%127, %c0_66, %c0_67] : memref<8x8x128xf32, #tpu.memory_space<vmem>>, vector<1x8x128xf32>
    %129 = vector.shape_cast %128 : vector<1x8x128xf32> to vector<8x128xf32>
    %130 = vector.shape_cast %126 : vector<8x128xf32> to vector<1x8x128xf32>
    tpu.vector_store %arg14[%127, %c0_66, %c0_67], %130 {strides = array<i32>} : memref<8x8x128xf32, #tpu.memory_space<vmem>>, vector<1x8x128xf32>,
    %c5_i32 = arith.constant 5 : i32
    %131 = arith.index_cast %c5_i32 : i32 to index
    %c0_68 = arith.constant 0 : index
    %c0_69 = arith.constant 0 : index
    %132 = vector.load %arg14[%131, %c0_68, %c0_69] : memref<8x8x128xf32, #tpu.memory_space<vmem>>, vector<1x8x128xf32>
    %133 = vector.shape_cast %132 : vector<1x8x128xf32> to vector<8x128xf32>
    %134 = arith.index_cast %c5_i32 : i32 to index
    %c0_70 = arith.constant 0 : index
    %c0_71 = arith.constant 0 : index
    %135 = vector.load %arg15[%134, %c0_70, %c0_71] : memref<8x8x128xf32, #tpu.memory_space<vmem>>, vector<1x8x128xf32>
    %136 = vector.shape_cast %135 : vector<1x8x128xf32> to vector<8x128xf32>
    %cst_72 = arith.constant dense<0.000000e+00> : vector<8x128xf32>
    %137 = tpu.matmul %126, %19, %cst_72 {dimension_numbers = #tpu.dot_dimension_numbers<[1], [0], [0], [1], [0, 0, 1, 1], [], []>} : vector<8x128xf32>, vector<128x128xf32>, vector<8x128xf32> -> vector<8x128xf32>
    %138 = arith.addf %137, %136 : vector<8x128xf32>
    %139 = arith.negf %138 : vector<8x128xf32>
    %140 = math.exp %139 : vector<8x128xf32>
    %cst_73 = arith.constant 1.000000e+00 : f32
    %141 = vector.broadcast %cst_73 : f32 to vector<8x128xf32>
    %142 = arith.addf %141, %140 : vector<8x128xf32>
    %143 = arith.divf %141, %142 : vector<8x128xf32>
    %144 = arith.mulf %143, %126 : vector<8x128xf32>
    %cst_74 = arith.constant 1.000000e+00 : f32
    %145 = vector.broadcast %cst_74 : f32 to vector<8x128xf32>
    %146 = arith.subf %145, %143 : vector<8x128xf32>
    %147 = arith.mulf %146, %133 : vector<8x128xf32>
    %148 = arith.addf %144, %147 : vector<8x128xf32>
    %149 = arith.index_cast %c5_i32 : i32 to index
    %c0_75 = arith.constant 0 : index
    %c0_76 = arith.constant 0 : index
    %150 = vector.load %arg14[%149, %c0_75, %c0_76] : memref<8x8x128xf32, #tpu.memory_space<vmem>>, vector<1x8x128xf32>
    %151 = vector.shape_cast %150 : vector<1x8x128xf32> to vector<8x128xf32>
    %152 = vector.shape_cast %148 : vector<8x128xf32> to vector<1x8x128xf32>
    tpu.vector_store %arg14[%149, %c0_75, %c0_76], %152 {strides = array<i32>} : memref<8x8x128xf32, #tpu.memory_space<vmem>>, vector<1x8x128xf32>,
    %c6_i32 = arith.constant 6 : i32
    %153 = arith.index_cast %c6_i32 : i32 to index
    %c0_77 = arith.constant 0 : index
    %c0_78 = arith.constant 0 : index
    %154 = vector.load %arg14[%153, %c0_77, %c0_78] : memref<8x8x128xf32, #tpu.memory_space<vmem>>, vector<1x8x128xf32>
    %155 = vector.shape_cast %154 : vector<1x8x128xf32> to vector<8x128xf32>
    %156 = arith.index_cast %c6_i32 : i32 to index
    %c0_79 = arith.constant 0 : index
    %c0_80 = arith.constant 0 : index
    %157 = vector.load %arg15[%156, %c0_79, %c0_80] : memref<8x8x128xf32, #tpu.memory_space<vmem>>, vector<1x8x128xf32>
    %158 = vector.shape_cast %157 : vector<1x8x128xf32> to vector<8x128xf32>
    %cst_81 = arith.constant dense<0.000000e+00> : vector<8x128xf32>
    %159 = tpu.matmul %148, %19, %cst_81 {dimension_numbers = #tpu.dot_dimension_numbers<[1], [0], [0], [1], [0, 0, 1, 1], [], []>} : vector<8x128xf32>, vector<128x128xf32>, vector<8x128xf32> -> vector<8x128xf32>
    %160 = arith.addf %159, %158 : vector<8x128xf32>
    %161 = arith.negf %160 : vector<8x128xf32>
    %162 = math.exp %161 : vector<8x128xf32>
    %cst_82 = arith.constant 1.000000e+00 : f32
    %163 = vector.broadcast %cst_82 : f32 to vector<8x128xf32>
    %164 = arith.addf %163, %162 : vector<8x128xf32>
    %165 = arith.divf %163, %164 : vector<8x128xf32>
    %166 = arith.mulf %165, %148 : vector<8x128xf32>
    %cst_83 = arith.constant 1.000000e+00 : f32
    %167 = vector.broadcast %cst_83 : f32 to vector<8x128xf32>
    %168 = arith.subf %167, %165 : vector<8x128xf32>
    %169 = arith.mulf %168, %155 : vector<8x128xf32>
    %170 = arith.addf %166, %169 : vector<8x128xf32>
    %171 = arith.index_cast %c6_i32 : i32 to index
    %c0_84 = arith.constant 0 : index
    %c0_85 = arith.constant 0 : index
    %172 = vector.load %arg14[%171, %c0_84, %c0_85] : memref<8x8x128xf32, #tpu.memory_space<vmem>>, vector<1x8x128xf32>
    %173 = vector.shape_cast %172 : vector<1x8x128xf32> to vector<8x128xf32>
    %174 = vector.shape_cast %170 : vector<8x128xf32> to vector<1x8x128xf32>
    tpu.vector_store %arg14[%171, %c0_84, %c0_85], %174 {strides = array<i32>} : memref<8x8x128xf32, #tpu.memory_space<vmem>>, vector<1x8x128xf32>,
    %c7_i32 = arith.constant 7 : i32
    %175 = arith.index_cast %c7_i32 : i32 to index
    %c0_86 = arith.constant 0 : index
    %c0_87 = arith.constant 0 : index
    %176 = vector.load %arg14[%175, %c0_86, %c0_87] : memref<8x8x128xf32, #tpu.memory_space<vmem>>, vector<1x8x128xf32>
    %177 = vector.shape_cast %176 : vector<1x8x128xf32> to vector<8x128xf32>
    %178 = arith.index_cast %c7_i32 : i32 to index
    %c0_88 = arith.constant 0 : index
    %c0_89 = arith.constant 0 : index
    %179 = vector.load %arg15[%178, %c0_88, %c0_89] : memref<8x8x128xf32, #tpu.memory_space<vmem>>, vector<1x8x128xf32>
    %180 = vector.shape_cast %179 : vector<1x8x128xf32> to vector<8x128xf32>
    %cst_90 = arith.constant dense<0.000000e+00> : vector<8x128xf32>
    %181 = tpu.matmul %170, %19, %cst_90 {dimension_numbers = #tpu.dot_dimension_numbers<[1], [0], [0], [1], [0, 0, 1, 1], [], []>} : vector<8x128xf32>, vector<128x128xf32>, vector<8x128xf32> -> vector<8x128xf32>
    %182 = arith.addf %181, %180 : vector<8x128xf32>
    %183 = arith.negf %182 : vector<8x128xf32>
    %184 = math.exp %183 : vector<8x128xf32>
    %cst_91 = arith.constant 1.000000e+00 : f32
    %185 = vector.broadcast %cst_91 : f32 to vector<8x128xf32>
    %186 = arith.addf %185, %184 : vector<8x128xf32>
    %187 = arith.divf %185, %186 : vector<8x128xf32>
    %188 = arith.mulf %187, %170 : vector<8x128xf32>
    %cst_92 = arith.constant 1.000000e+00 : f32
    %189 = vector.broadcast %cst_92 : f32 to vector<8x128xf32>
    %190 = arith.subf %189, %187 : vector<8x128xf32>
    %191 = arith.mulf %190, %177 : vector<8x128xf32>
    %192 = arith.addf %188, %191 : vector<8x128xf32>
    %193 = arith.index_cast %c7_i32 : i32 to index
    %c0_93 = arith.constant 0 : index
    %c0_94 = arith.constant 0 : index
    %194 = vector.load %arg14[%193, %c0_93, %c0_94] : memref<8x8x128xf32, #tpu.memory_space<vmem>>, vector<1x8x128xf32>
    %195 = vector.shape_cast %194 : vector<1x8x128xf32> to vector<8x128xf32>
    %196 = vector.shape_cast %192 : vector<8x128xf32> to vector<1x8x128xf32>
    tpu.vector_store %arg14[%193, %c0_93, %c0_94], %196 {strides = array<i32>} : memref<8x8x128xf32, #tpu.memory_space<vmem>>, vector<1x8x128xf32>,
    %c8_i32 = arith.constant 8 : i32
    %c0_95 = arith.constant 0 : index
    %c0_96 = arith.constant 0 : index
    %197 = vector.load %arg13[%c0_95, %c0_96] : memref<8x128xf32, #tpu.memory_space<vmem>>, vector<8x128xf32>
    tpu.vector_store %arg13[%c0_95, %c0_96], %192 {strides = array<i32>} : memref<8x128xf32, #tpu.memory_space<vmem>>, vector<8x128xf32>,
    %c0_97 = arith.constant 0 : index
    %c0_98 = arith.constant 0 : index
    %c0_99 = arith.constant 0 : index
    %198 = vector.load %arg14[%c0_97, %c0_98, %c0_99] : memref<8x8x128xf32, #tpu.memory_space<vmem>>, vector<8x8x128xf32>
    %199 = vector.shape_cast %198 : vector<8x8x128xf32> to vector<64x128xf32>
    %c0_100 = arith.constant 0 : index
    %c0_101 = arith.constant 0 : index
    %200 = vector.load %arg8[%c0_100, %c0_101] : memref<128x128xf32, #tpu.memory_space<vmem>>, vector<128x128xf32>
    %cst_102 = arith.constant dense<0.000000e+00> : vector<64x128xf32>
    %201 = tpu.matmul %199, %200, %cst_102 {dimension_numbers = #tpu.dot_dimension_numbers<[1], [0], [0], [1], [0, 0, 1, 1], [], []>} : vector<64x128xf32>, vector<128x128xf32>, vector<64x128xf32> -> vector<64x128xf32>
    %c0_103 = arith.constant 0 : index
    %c0_104 = arith.constant 0 : index
    %202 = vector.load %arg9[%c0_103, %c0_104] : memref<1x128xf32, #tpu.memory_space<vmem>>, vector<1x128xf32>
    %203 = vector.broadcast %202 : vector<1x128xf32> to vector<64x128xf32>
    %204 = arith.addf %201, %203 : vector<64x128xf32>
    %205 = vector.shape_cast %204 : vector<64x128xf32> to vector<8x8x128xf32>
    %c0_105 = arith.constant 0 : index
    %c0_106 = arith.constant 0 : index
    %c0_107 = arith.constant 0 : index
    %206 = vector.load %arg11[%c0_105, %c0_106, %c0_107] : memref<8x8x128xf32, #tpu.memory_space<vmem>>, vector<8x8x128xf32>
    tpu.vector_store %arg11[%c0_105, %c0_106, %c0_107], %205 {strides = array<i32>} : memref<8x8x128xf32, #tpu.memory_space<vmem>>, vector<8x8x128xf32>,
    %c0_i32_108 = arith.constant 0 : i32
    %207 = arith.cmpi eq, %arg1, %c0_i32_108 : i32
    %208 = arith.extui %207 : i1 to i32
    %c0_i32_109 = arith.constant 0 : i32
    %209 = arith.cmpi ne, %208, %c0_i32_109 : i32
    scf.if %209 {
      %c0_110 = arith.constant 0 : index
      %c0_111 = arith.constant 0 : index
      %210 = vector.load %arg12[%c0_110, %c0_111] : memref<8x128xf32, #tpu.memory_space<vmem>>, vector<8x128xf32>
      tpu.vector_store %arg12[%c0_110, %c0_111], %192 {strides = array<i32>} : memref<8x128xf32, #tpu.memory_space<vmem>>, vector<8x128xf32>,
    } else {
    }
    return
  }
  func.func @transform_0(%arg0: i32, %arg1: i32) -> (i32, i32, i32) {
    %c0_i32 = arith.constant 0 : i32
    %c0_i32_0 = arith.constant 0 : i32
    return %arg1, %arg0, %c0_i32 : i32, i32, i32
  }
  func.func @transform_1(%arg0: i32, %arg1: i32) -> (i32, i32) {
    %c0_i32 = arith.constant 0 : i32
    %c0_i32_0 = arith.constant 0 : i32
    %c0_i32_1 = arith.constant 0 : i32
    return %c0_i32, %c0_i32_0 : i32, i32
  }
  func.func @transform_2(%arg0: i32, %arg1: i32) -> (i32, i32) {
    %c0_i32 = arith.constant 0 : i32
    %c0_i32_0 = arith.constant 0 : i32
    %c0_i32_1 = arith.constant 0 : i32
    return %c0_i32, %c0_i32_0 : i32, i32
  }
  func.func @transform_3(%arg0: i32, %arg1: i32) -> (i32, i32) {
    %c0_i32 = arith.constant 0 : i32
    %c0_i32_0 = arith.constant 0 : i32
    %c0_i32_1 = arith.constant 0 : i32
    return %c0_i32, %c0_i32_0 : i32, i32
  }
  func.func @transform_4(%arg0: i32, %arg1: i32) -> (i32, i32) {
    %c0_i32 = arith.constant 0 : i32
    %c0_i32_0 = arith.constant 0 : i32
    %c0_i32_1 = arith.constant 0 : i32
    return %c0_i32, %c0_i32_0 : i32, i32
  }
  func.func @transform_5(%arg0: i32, %arg1: i32) -> (i32, i32) {
    %c0_i32 = arith.constant 0 : i32
    %c0_i32_0 = arith.constant 0 : i32
    %c0_i32_1 = arith.constant 0 : i32
    return %c0_i32, %c0_i32_0 : i32, i32
  }
  func.func @transform_6(%arg0: i32, %arg1: i32) -> (i32, i32) {
    %c0_i32 = arith.constant 0 : i32
    %c0_i32_0 = arith.constant 0 : i32
    %c0_i32_1 = arith.constant 0 : i32
    return %c0_i32, %c0_i32_0 : i32, i32
  }
  func.func @transform_7(%arg0: i32, %arg1: i32) -> (i32, i32) {
    %c0_i32 = arith.constant 0 : i32
    %c0_i32_0 = arith.constant 0 : i32
    %c0_i32_1 = arith.constant 0 : i32
    return %c0_i32, %c0_i32_0 : i32, i32
  }
  func.func @transform_8(%arg0: i32, %arg1: i32) -> (i32, i32) {
    %c0_i32 = arith.constant 0 : i32
    %c0_i32_0 = arith.constant 0 : i32
    return %arg0, %c0_i32 : i32, i32
  }
  func.func @transform_9(%arg0: i32, %arg1: i32) -> (i32, i32, i32) {
    %c0_i32 = arith.constant 0 : i32
    %c0_i32_0 = arith.constant 0 : i32
    return %arg1, %arg0, %c0_i32 : i32, i32, i32
  }
  func.func @transform_10(%arg0: i32, %arg1: i32) -> (i32, i32) {
    %c0_i32 = arith.constant 0 : i32
    %c0_i32_0 = arith.constant 0 : i32
    return %arg0, %c0_i32 : i32, i32
  }
}

</mosaic_0001>

<bundles_post_ra>
// kernel: minimal_rnn_forward.2
= control target key start
LH: loop header
LB: loop body
LE: loop exit
PB: predicated region body
PF: predicated region fallthrough
CT: control target
= control target key end

     0   :  { %16 = vsyncpa [#allocation6], 0  ;;  %s2034_s13 = smov [#allocation5]   ;;  %s2479_s0 = inlined_call_operand.vmem [shape: f32[8,8,4], index: 0, kind: input, shape index: {}]   ;;  %s2480_s1 = inlined_call_operand.vmem [shape: f32[4,128], index: 1, kind: input, shape index: {}]   ;;  %s2481_s2 = inlined_call_operand.vmem [shape: f32[1,128], index: 2, kind: input, shape index: {}]   ;;  %s2482_s3 = inlined_call_operand.vmem [shape: f32[4,128], index: 3, kind: input, shape index: {}]   ;;  %s2483_s4 = inlined_call_operand.vmem [shape: f32[1,128], index: 4, kind: input, shape index: {}]   ;;  %s2484_s5 = inlined_call_operand.vmem [shape: f32[128,128], index: 5, kind: input, shape index: {}]   ;;  %s2485_s6 = inlined_call_operand.hbm [shape: f32[128,128], index: 6, kind: input, shape index: {}]   ;;  %s2486_s7 = inlined_call_operand.vmem [shape: f32[1,128], index: 7, kind: input, shape index: {}]   ;;  %s2487_s8 = inlined_call_operand.vmem [shape: f32[8,128], index: 8, kind: input, shape index: {}]   ;;  %s2488_s9 = inlined_call_operand.vmem [shape: f32[8,8,128], index: 9, kind: output, shape index: {0}]   ;;  %s2489_s10 = inlined_call_operand.vmem [shape: f32[8,128], index: 10, kind: output, shape index: {1}]  }
   0x1   :  { %s34_s14 = sshll.u32 %s2034_s13, 4  ;;  %s2010_s17 = scalar_lea.hbm %s2485_s6, 2048  ;;  %s35_s14 = int_to_ptr.vmem [resolvable:$true] %s34_s14 }
   0x2   :  { %p2011_p0 = scmp.ne.s32.totalorder %s2485_s6, %s2010_s17  ;;  %p2014_p1 = scmp.lt.u32.totalorder %s2010_s17, %s2485_s6 }
   0x4   :  { %p2016_p2 = pnand %p2014_p1, %p2011_p0 }
   0x6   :  { %2019 = shalt.err (!%p2016_p2)
}
   0x7   :  { %s2020_s22 = scalar_lea.vmem %s35_s14, 2048  ;;  %p2025_p4 = scmp.lt.s32.totalorder %s35_s14, %s35_s14 }
   0x8   :  { %p2021_p3 = scmp.ne.s32.totalorder %s35_s14, %s2020_s22  ;;  %p2026_p5 = scmp.lt.s32.totalorder %s2020_s22, %s2020_s22 }
   0xa   :  { %p2027_p6 = por %p2026_p5, %p2025_p4 }
   0xc   :  { %p2028_p7 = pnand %p2027_p6, %p2021_p3 }
   0xe   :  { %2031 = shalt.err (!%p2028_p7)
}
   0xf   :  { %s2035_s23 = smov 128   ;;  %s2036_s24 = smov 8  }
  0x10   :  { %40 = dma.hbm_to_vmem [thread:$0]  %s2485_s6, 2048, %s35_s14, [#allocation6], %s2035_s23, %s2035_s23, %s2036_s24  }
  0x11   :  { %2032 = dma.done.wait [#allocation6], 2048  }
  0x12   :  { %2033 = vsyncadd [#allocation6], 4294965248  ;;  %v2037_v0 = vmov 0.0|0.0   ;;  %vm2038_vm0 = vmmov 0   ;;  %v2039_v1 = vmov 0.0   ;;  %v336_v2 = vld [vmem:[%s2484_s5] sm:$0xff] }
  0x13   :  { %1748 = vmatprep.subr.bf16.mxu1 %v2037_v0  ;;  %1456 = vmatprep.mubr.msk.f32.mxu1 %vm2038_vm0, %v2039_v1  ;;  %v337_v3 = vld [vmem:[%s2484_s5 + $0x8] sm:$0xff]  ;;  %v338_v4 = vld [vmem:[%s2484_s5 + $0x10] sm:$0xff]  ;;  %vm95_vm1 = vcmask 1043456   ;;  %v339_v6 = vld [vmem:[%s2484_s5 + $0x18] sm:$0xff]  ;;  %vm70_vm2 = vcmask 31744  }
  0x14   :  { %v2119_v5 = vpack.c.bf16 %v337_v3, %v336_v2  ;;  %v62_v7 = vld [vmem:[%s2480_s1] sm:$0xf]  ;;  %v2131_v9 = vpack.c.bf16 %v339_v6, %v338_v4  ;;  %v55_v10 = vld [vmem:[%s2479_s0 + $0x8] sm:$0xff]  ;;  %v56_v14 = vld [vmem:[%s2479_s0 + $0x10] sm:$0xff] }
  0x15   :  { %v54_v8 = vld [vmem:[%s2479_s0] sm:$0xff]  ;;  %1396 = vmatprep.subr.msk.mxu0 %vm95_vm1, %v62_v7  ;;  %v341_v13 = vld [vmem:[%s2484_s5 + $0x28] sm:$0xff]  ;;  %v57_v16 = vld [vmem:[%s2479_s0 + $0x18] sm:$0xff] }
  0x16   :  { %1750 = vmatpush3.bf16.msra.mxu1 %v2119_v5  ;;  %v204_v11 = vld [vmem:[%s2482_s3] sm:$0xf]  ;;  %1397 = vmatpush3.msk.msra.mxu0 %vm95_vm1, %v62_v7  ;;  %v342_v17 = vld [vmem:[%s2484_s5 + $0x30] sm:$0xff]  ;;  %v343_v18 = vld [vmem:[%s2484_s5 + $0x38] sm:$0xff] }
  0x17   :  { %1751 = vmatprep.subr.bf16.mxu1 %v2037_v0  ;;  %v340_v12 = vld [vmem:[%s2484_s5 + $0x20] sm:$0xff]  ;;  %1398 = vmatprep.mubr.msk.f32.mxu0 %vm70_vm2, %v54_v8  ;;  %v2175_v20 = vpack.c.bf16 %v343_v18, %v342_v17  ;;  %v59_v21 = vld [vmem:[%s2479_s0 + $0x28] sm:$0xff]  ;;  %v60_v24 = vld [vmem:[%s2479_s0 + $0x30] sm:$0xff] }
  0x18   :  { %1410 = vmatprep.subr.msk.mxu0 %vm95_vm1, %v204_v11  ;;  %1399 = vmatmul.mubr.msk.f32.vlgmr.msra.gmra.mrb[0].mxu0 %vm70_vm2, %v55_v10  ;;  %v2155_v15 = vpack.c.bf16 %v341_v13, %v340_v12  ;;  %v58_v19 = vld [vmem:[%s2479_s0 + $0x20] sm:$0xff]  ;;  %v345_v23 = vld [vmem:[%s2484_s5 + $0x48] sm:$0xff]  ;;  %v61_v26 = vld [vmem:[%s2479_s0 + $0x38] sm:$0xff] }
  0x19   :  { %1411 = vmatpush3.msk.msra.mxu0 %vm95_vm1, %v204_v11  ;;  %1401 = vmatprep.mubr.msk.f32.mxu0 %vm70_vm2, %v56_v14  ;;  %v344_v22 = vld [vmem:[%s2484_s5 + $0x40] sm:$0xff]  ;;  %v346_v27 = vld [vmem:[%s2484_s5 + $0x50] sm:$0xff]  ;;  %v347_v28 = vld [vmem:[%s2484_s5 + $0x58] sm:$0xff] }
  0x1a   :  { %1753 = vmatpush3.bf16.msra.mxu1 %v2131_v9  ;;  %1796 = vmatprep.subr.bf16.mxu0 %v2037_v0  ;;  %v2193_v25 = vpack.c.bf16 %v345_v23, %v344_v22  ;;  %v2208_v29 = vpack.c.bf16 %v347_v28, %v346_v27  ;;  %v348_v30 = vld [vmem:[%s2484_s5 + $0x60] sm:$0xff]  ;;  %v349_v31 = vld [vmem:[%s2484_s5 + $0x68] sm:$0xff]  ;;  %v350_v33 = vld [vmem:[%s2484_s5 + $0x70] sm:$0xff] }
  0x1b   :  { %1754 = vmatprep.subr.bf16.mxu1 %v2037_v0  ;;  %v2220_v32 = vpack.c.bf16 %v349_v31, %v348_v30  ;;  %v351_v34 = vld [vmem:[%s2484_s5 + $0x78] sm:$0xff]  ;;  %v2245_v36 = vld [vmem:[%s2487_s8] sm:$0xff] }
  0x1c   :  { %1402 = vmatmul.mubr.msk.f32.gmra.mrb[2].mxu0 %vm70_vm2, %v57_v16  ;;  %v2234_v35 = vpack.c.bf16 %v351_v34, %v350_v33  ;;  %v1189_v37 = vld [vmem:[%s2481_s2] ss:$0 sm:$0xff] }
  0x1d   :  { %1404 = vmatprep.mubr.msk.f32.mxu0 %vm70_vm2, %v58_v19  ;;  %v2303_v55 = vld [vmem:[%s2483_s4] ss:$0 sm:$0xff] }
  0x1e   :  { %1756 = vmatpush3.bf16.msra.mxu1 %v2155_v15 }
  0x1f   :  { %1757 = vmatprep.subr.bf16.mxu1 %v2037_v0 }
  0x20   :  { %1405 = vmatmul.mubr.msk.f32.gmra.mrb[4].mxu0 %vm70_vm2, %v59_v21 }
  0x21   :  { %1407 = vmatprep.mubr.msk.f32.mxu0 %vm70_vm2, %v60_v24 }
  0x22   :  { %1759 = vmatpush3.bf16.msra.mxu1 %v2175_v20 }
  0x23   :  { %1760 = vmatprep.subr.bf16.mxu1 %v2037_v0 }
  0x24   :  { %1408 = vmatmul.mubr.msk.f32.gmra.mrb[6].mxu0 %vm70_vm2, %v61_v26 }
  0x25   :  { %1412 = vmatprep.mubr.msk.f32.mxu0 %vm70_vm2, %v54_v8 }
  0x26   :  { %1762 = vmatpush3.bf16.msra.mxu1 %v2193_v25 }
  0x27   :  { %1763 = vmatprep.subr.bf16.mxu1 %v2037_v0 }
  0x28   :  { %1413 = vmatmul.mubr.msk.f32.vlgmr.msra.gmra.mrb[8].mxu0 %vm70_vm2, %v55_v10 }
  0x29   :  { %1798 = vmatpush3.bf16.msra.mxu0 %v2119_v5  ;;  %1415 = vmatprep.mubr.msk.f32.mxu0 %vm70_vm2, %v56_v14 }
  0x2a   :  { %1765 = vmatpush3.bf16.msra.mxu1 %v2208_v29  ;;  %1799 = vmatprep.subr.bf16.mxu0 %v2037_v0 }
  0x2b   :  { %1766 = vmatprep.subr.bf16.mxu1 %v2037_v0 }
  0x2c   :  { %1416 = vmatmul.mubr.msk.f32.gmra.mrb[10].mxu0 %vm70_vm2, %v57_v16 }
  0x2d   :  { %1801 = vmatpush3.bf16.msra.mxu0 %v2131_v9  ;;  %1418 = vmatprep.mubr.msk.f32.mxu0 %vm70_vm2, %v58_v19 }
  0x2e   :  { %1768 = vmatpush3.bf16.msra.mxu1 %v2220_v32  ;;  %1802 = vmatprep.subr.bf16.mxu0 %v2037_v0 }
  0x2f   :  { %1769 = vmatprep.subr.bf16.mxu1 %v2037_v0 }
  0x30   :  { %1419 = vmatmul.mubr.msk.f32.gmra.mrb[12].mxu0 %vm70_vm2, %v59_v21 }
  0x31   :  { %1804 = vmatpush3.bf16.msra.mxu0 %v2155_v15  ;;  %1421 = vmatprep.mubr.msk.f32.mxu0 %vm70_vm2, %v60_v24 }
  0x32   :  { %1771 = vmatpush3.bf16.msra.mxu1 %v2234_v35  ;;  %1805 = vmatprep.subr.bf16.mxu0 %v2037_v0 }
  0x33   :  { %1772 = vmatprep.subr.bf16.mxu1 %v2037_v0 }
  0x34   :  { %1422 = vmatmul.mubr.msk.f32.gmra.mrb[14].mxu0 %vm70_vm2, %v61_v26 }
  0x35   :  { %1457 = vmatmul.mubr.f32.vlgmr.msra.gmra.mrb[0].mxu1 %v2245_v36  ;;  %1807 = vmatpush3.bf16.msra.mxu0 %v2175_v20 }
  0x36   :  { %1774 = vmatpush3.bf16.msra.mxu1 %v2119_v5  ;;  %1491 = vmatprep.mubr.msk.f32.mxu1 %vm2038_vm0, %v2039_v1 }
  0x37   :  { %1775 = vmatprep.subr.bf16.mxu1 %v2037_v0  ;;  %1808 = vmatprep.subr.bf16.mxu0 %v2037_v0 }
  0x38   :  { %1526 = vmatprep.mubr.msk.f32.mxu0 %vm2038_vm0, %v2039_v1 }
  0x39   :  { %1810 = vmatpush3.bf16.msra.mxu0 %v2193_v25 }
  0x3a   :  { %1777 = vmatpush3.bf16.msra.mxu1 %v2131_v9  ;;  %1811 = vmatprep.subr.bf16.mxu0 %v2037_v0 }
  0x3b   :  { %1778 = vmatprep.subr.bf16.mxu1 %v2037_v0 }
  0x3d   :  { %1813 = vmatpush3.bf16.msra.mxu0 %v2208_v29 }
  0x3e   :  { %1780 = vmatpush3.bf16.msra.mxu1 %v2155_v15  ;;  %1814 = vmatprep.subr.bf16.mxu0 %v2037_v0 }
  0x3f   :  { %1781 = vmatprep.subr.bf16.mxu1 %v2037_v0 }
  0x41   :  { %1816 = vmatpush3.bf16.msra.mxu0 %v2220_v32 }
  0x42   :  { %1783 = vmatpush3.bf16.msra.mxu1 %v2175_v20  ;;  %1817 = vmatprep.subr.bf16.mxu0 %v2037_v0 }
  0x43   :  { %1784 = vmatprep.subr.bf16.mxu1 %v2037_v0 }
  0x45   :  { %1819 = vmatpush3.bf16.msra.mxu0 %v2234_v35 }
  0x46   :  { %1786 = vmatpush3.bf16.msra.mxu1 %v2193_v25  ;;  %1844 = vmatprep.subr.bf16.mxu0 %v2037_v0 }
  0x47   :  { %1787 = vmatprep.subr.bf16.mxu1 %v2037_v0 }
  0x4a   :  { %1789 = vmatpush3.bf16.msra.mxu1 %v2208_v29 }
  0x4b   :  { %1790 = vmatprep.subr.bf16.mxu1 %v2037_v0 }
  0x4e   :  { %1792 = vmatpush3.bf16.msra.mxu1 %v2220_v32 }
  0x4f   :  { %1793 = vmatprep.subr.bf16.mxu1 %v2037_v0 }
  0x52   :  { %1795 = vmatpush3.bf16.msra.mxu1 %v2234_v35 }
  0x53   :  { %1820 = vmatprep.subr.bf16.mxu1 %v2037_v0 }
  0xeb   :  { %v1400_v38 = vpop.f32.mrb[0].mxu0 }
  0xec   :  { %v2286_v39 = vadd.f32 %v1400_v38, %v1189_v37  ;;  %v165_v40 = vpop.f32.mrb[1].mxu0 }
  0xed   :  { %v166_v2 = vadd.f32 %v1189_v37, %v165_v40 }
  0xef   :  { %v1403_v41 = vpop.f32.mrb[2].mxu0 }
  0xf0   :  { %v2288_v42 = vadd.f32 %v1403_v41, %v1189_v37  ;;  %v175_v43 = vpop.f32.mrb[3].mxu0 }
  0xf1   :  { %v2290_v44 = vadd.f32 %v1189_v37, %v175_v43 }
  0xf3   :  { %v1406_v45 = vpop.f32.mrb[4].mxu0 }
  0xf4   :  { %v2292_v46 = vadd.f32 %v1406_v45, %v1189_v37  ;;  %v185_v47 = vpop.f32.mrb[5].mxu0 }
  0xf5   :  { %v2294_v48 = vadd.f32 %v1189_v37, %v185_v47 }
  0xf7   :  { %v1409_v49 = vpop.f32.mrb[6].mxu0 }
  0xf8   :  { %v2296_v50 = vadd.f32 %v1409_v49, %v1189_v37  ;;  %v195_v51 = vpop.f32.mrb[7].mxu0 }
  0xf9   :  { %v2298_v52 = vadd.f32 %v1189_v37, %v195_v51 }
  0xfb   :  { %v1414_v53 = vpop.f32.mrb[8].mxu0 }
  0xfc   :  { %v281_v54 = vpop.f32.mrb[9].mxu0  ;;  %v287_v16 = vadd.f32 %v1414_v53, %v2303_v55 }
  0xfd   :  { %v282_v56 = vadd.f32 %v2303_v55, %v281_v54 }
  0xff   :  { %v2328_v8 = vpop.f32.mrb[10].mxu0 }
 0x100   :  { %v291_v10 = vpop.f32.mrb[11].mxu0 }
 0x101   :  { %v292_v31 = vadd.f32 %v2303_v55, %v291_v10 }
 0x103   :  { %v2330_v11 = vpop.f32.mrb[12].mxu0 }
 0x104   :  { %v2332_v12 = vpop.f32.mrb[13].mxu0 }
 0x107   :  { %v2334_v13 = vpop.f32.mrb[14].mxu0 }
 0x108   :  { %v421_v57 = vpop.f32.mrb[0].mxu1  ;;  %v2336_v14 = vpop.f32.mrb[15].mxu0 }
 0x109   :  { %v422_v58 = vadd.f32 %v421_v57, %v282_v56  ;;  %v1458_v59 = vpop.f32.mrb[1].mxu1 }
 0x10b   :  { %v1209_v60 = vmul.f32 -1.442695, %v422_v58 }
 0x10d   :  { %1978 = vpow2.f32 %v1209_v60 }
 0x117   :  { %v1979_v61 = vpop.eup %1978 }
 0x118   :  { %v428_v62 = vadd.f32 1.0, %v1979_v61 }
 0x11a   :  { %1980 = vrcp.f32 %v428_v62 }
 0x124   :  { %v1981_v63 = vpop.eup %1980 }
 0x125   :  { %v432_v3 = vsub.f32 1.0, %v1981_v63  ;;  %v431_v4 = vmul.f32 %v1981_v63, %v2245_v36 }
 0x127   :  { %v433_v6 = vmul.f32 %v432_v3, %v166_v2 }
 0x129   :  { %v2307_v7 = vadd.f32 %v433_v6, %v431_v4 }
 0x12b   :  { %1492 = vmatmul.mubr.f32.vlgmr.msra.gmra.mrb[2].mxu1 %v2307_v7 }
 0x12c   :  { %1822 = vmatpush3.bf16.msra.mxu1 %v2119_v5  ;;  %1561 = vmatprep.mubr.msk.f32.mxu1 %vm2038_vm0, %v2039_v1 }
 0x12d   :  { %1823 = vmatprep.subr.bf16.mxu1 %v2037_v0 }
 0x130   :  { %1825 = vmatpush3.bf16.msra.mxu1 %v2131_v9 }
 0x131   :  { %1826 = vmatprep.subr.bf16.mxu1 %v2037_v0 }
 0x134   :  { %1828 = vmatpush3.bf16.msra.mxu1 %v2155_v15 }
 0x135   :  { %1829 = vmatprep.subr.bf16.mxu1 %v2037_v0 }
 0x138   :  { %1831 = vmatpush3.bf16.msra.mxu1 %v2175_v20 }
 0x139   :  { %1832 = vmatprep.subr.bf16.mxu1 %v2037_v0 }
 0x13c   :  { %1834 = vmatpush3.bf16.msra.mxu1 %v2193_v25 }
 0x13d   :  { %1835 = vmatprep.subr.bf16.mxu1 %v2037_v0 }
 0x140   :  { %1837 = vmatpush3.bf16.msra.mxu1 %v2208_v29 }
 0x141   :  { %1838 = vmatprep.subr.bf16.mxu1 %v2037_v0 }
 0x144   :  { %1840 = vmatpush3.bf16.msra.mxu1 %v2220_v32 }
 0x145   :  { %1841 = vmatprep.subr.bf16.mxu1 %v2037_v0 }
 0x148   :  { %1843 = vmatpush3.bf16.msra.mxu1 %v2234_v35 }
 0x149   :  { %1868 = vmatprep.subr.bf16.mxu1 %v2037_v0 }
 0x1fe   :  { %v506_v17 = vpop.f32.mrb[2].mxu1 }
 0x1ff   :  { %v507_v18 = vadd.f32 %v506_v17, %v287_v16  ;;  %v1493_v19 = vpop.f32.mrb[3].mxu1 }
 0x201   :  { %v1210_v21 = vmul.f32 -1.442695, %v507_v18 }
 0x203   :  { %1982 = vpow2.f32 %v1210_v21 }
 0x20d   :  { %v1983_v22 = vpop.eup %1982 }
 0x20e   :  { %v513_v23 = vadd.f32 1.0, %v1983_v22 }
 0x210   :  { %1984 = vrcp.f32 %v513_v23  ;;  %v1043_v23 = vld [vmem:[#allocation5 + $0x18] sm:$0xff] }
 0x21a   :  { %v1985_v24 = vpop.eup %1984 }
 0x21b   :  { %v517_v26 = vsub.f32 1.0, %v1985_v24  ;;  %v516_v27 = vmul.f32 %v1985_v24, %v2307_v7 }
 0x21d   :  { %v518_v28 = vmul.f32 %v517_v26, %v2286_v39 }
 0x21f   :  { %v2341_v30 = vadd.f32 %v518_v28, %v516_v27  ;;  %v1044_v28 = vld [vmem:[#allocation5 + $0x20] sm:$0xff] }
 0x221   :  { %1527 = vmatmul.mubr.f32.vlgmr.msra.gmra.mrb[16].mxu0 %v2341_v30 }
 0x222   :  { %1846 = vmatpush3.bf16.msra.mxu0 %v2119_v5  ;;  %1596 = vmatprep.mubr.msk.f32.mxu0 %vm2038_vm0, %v2039_v1 }
 0x223   :  { %1847 = vmatprep.subr.bf16.mxu0 %v2037_v0 }
 0x226   :  { %1849 = vmatpush3.bf16.msra.mxu0 %v2131_v9 }
 0x227   :  { %1850 = vmatprep.subr.bf16.mxu0 %v2037_v0 }
 0x22a   :  { %1852 = vmatpush3.bf16.msra.mxu0 %v2155_v15 }
 0x22b   :  { %1853 = vmatprep.subr.bf16.mxu0 %v2037_v0 }
 0x22e   :  { %1855 = vmatpush3.bf16.msra.mxu0 %v2175_v20 }
 0x22f   :  { %1856 = vmatprep.subr.bf16.mxu0 %v2037_v0 }
 0x232   :  { %1858 = vmatpush3.bf16.msra.mxu0 %v2193_v25 }
 0x233   :  { %1859 = vmatprep.subr.bf16.mxu0 %v2037_v0 }
 0x236   :  { %1861 = vmatpush3.bf16.msra.mxu0 %v2208_v29 }
 0x237   :  { %1862 = vmatprep.subr.bf16.mxu0 %v2037_v0 }
 0x23a   :  { %1864 = vmatpush3.bf16.msra.mxu0 %v2220_v32 }
 0x23b   :  { %1865 = vmatprep.subr.bf16.mxu0 %v2037_v0 }
 0x23e   :  { %1867 = vmatpush3.bf16.msra.mxu0 %v2234_v35 }
 0x23f   :  { %1892 = vmatprep.subr.bf16.mxu0 %v2037_v0 }
 0x2f4   :  { %v591_v33 = vpop.f32.mrb[16].mxu0 }
 0x2f5   :  { %v592_v34 = vadd.f32 %v591_v33, %v292_v31  ;;  %v1528_v36 = vpop.f32.mrb[17].mxu0  ;;  %v1046_v33 = vld [vmem:[#allocation5 + $0x30] sm:$0xff] }
 0x2f7   :  { %v1211_v37 = vmul.f32 -1.442695, %v592_v34  ;;  %v1047_v34 = vld [vmem:[#allocation5 + $0x38] sm:$0xff] }
 0x2f8   :  { %v1952_v36 = vpack.c.bf16 %v1047_v34, %v1046_v33 }
 0x2f9   :  { %1986 = vpow2.f32 %v1211_v37  ;;  %v1048_v37 = vld [vmem:[#allocation5 + $0x40] sm:$0xff] }
 0x303   :  { %v1987_v38 = vpop.eup %1986 }
 0x304   :  { %v598_v39 = vadd.f32 1.0, %v1987_v38  ;;  %v1049_v38 = vld [vmem:[#allocation5 + $0x48] sm:$0xff] }
 0x306   :  { %1988 = vrcp.f32 %v598_v39  ;;  %v1050_v39 = vld [vmem:[#allocation5 + $0x50] sm:$0xff] }
 0x310   :  { %v1989_v40 = vpop.eup %1988 }
 0x311   :  { %v602_v41 = vsub.f32 1.0, %v1989_v40  ;;  %v601_v43 = vmul.f32 %v1989_v40, %v2341_v30  ;;  %v1051_v40 = vld [vmem:[#allocation5 + $0x58] sm:$0xff] }
 0x313   :  { %v603_v45 = vmul.f32 %v602_v41, %v2290_v44  ;;  %v297_v44 = vadd.f32 %v2328_v8, %v2303_v55  ;;  %v1960_v41 = vpack.c.bf16 %v1051_v40, %v1050_v39 }
 0x315   :  { %v2365_v47 = vadd.f32 %v603_v45, %v601_v43  ;;  %v1052_v43 = vld [vmem:[#allocation5 + $0x60] sm:$0xff]  ;;  %v1053_v45 = vld [vmem:[#allocation5 + $0x68] sm:$0xff] }
 0x317   :  { %1562 = vmatmul.mubr.f32.vlgmr.msra.gmra.mrb[4].mxu1 %v2365_v47 }
 0x318   :  { %1870 = vmatpush3.bf16.msra.mxu1 %v2119_v5  ;;  %1631 = vmatprep.mubr.msk.f32.mxu1 %vm2038_vm0, %v2039_v1 }
 0x319   :  { %1871 = vmatprep.subr.bf16.mxu1 %v2037_v0 }
 0x31c   :  { %1873 = vmatpush3.bf16.msra.mxu1 %v2131_v9 }
 0x31d   :  { %1874 = vmatprep.subr.bf16.mxu1 %v2037_v0 }
 0x320   :  { %1876 = vmatpush3.bf16.msra.mxu1 %v2155_v15 }
 0x321   :  { %1877 = vmatprep.subr.bf16.mxu1 %v2037_v0 }
 0x324   :  { %1879 = vmatpush3.bf16.msra.mxu1 %v2175_v20 }
 0x325   :  { %1880 = vmatprep.subr.bf16.mxu1 %v2037_v0 }
 0x328   :  { %1882 = vmatpush3.bf16.msra.mxu1 %v2193_v25 }
 0x329   :  { %1883 = vmatprep.subr.bf16.mxu1 %v2037_v0 }
 0x32c   :  { %1885 = vmatpush3.bf16.msra.mxu1 %v2208_v29 }
 0x32d   :  { %1886 = vmatprep.subr.bf16.mxu1 %v2037_v0 }
 0x330   :  { %1888 = vmatpush3.bf16.msra.mxu1 %v2220_v32 }
 0x331   :  { %1889 = vmatprep.subr.bf16.mxu1 %v2037_v0 }
 0x334   :  { %1891 = vmatpush3.bf16.msra.mxu1 %v2234_v35 }
 0x335   :  { %1916 = vmatprep.subr.bf16.mxu1 %v2037_v0 }
 0x3ea   :  { %v676_v49 = vpop.f32.mrb[4].mxu1 }
 0x3eb   :  { %v677_v51 = vadd.f32 %v676_v49, %v297_v44  ;;  %v1563_v53 = vpop.f32.mrb[5].mxu1  ;;  %v1054_v44 = vld [vmem:[#allocation5 + $0x70] sm:$0xff]  ;;  %v1055_v49 = vld [vmem:[#allocation5 + $0x78] sm:$0xff] }
 0x3ec   :  { %v312_v53 = vadd.f32 %v2303_v55, %v2336_v14 }
 0x3ed   :  { %v1212_v54 = vmul.f32 -1.442695, %v677_v51  ;;  %v1968_v51 = vpack.c.bf16 %v1055_v49, %v1054_v44 }
 0x3ef   :  { %1990 = vpow2.f32 %v1212_v54 }
 0x3f9   :  { %v1991_v56 = vpop.eup %1990 }
 0x3fa   :  { %v683_v57 = vadd.f32 1.0, %v1991_v56 }
 0x3fc   :  { %1992 = vrcp.f32 %v683_v57 }
 0x406   :  { %v1993_v58 = vpop.eup %1992 }
 0x407   :  { %v687_v59 = vsub.f32 1.0, %v1993_v58  ;;  %v686_v60 = vmul.f32 %v1993_v58, %v2365_v47 }
 0x409   :  { %v688_v61 = vmul.f32 %v687_v59, %v2288_v42  ;;  %v302_v42 = vadd.f32 %v2303_v55, %v2332_v12 }
 0x40b   :  { %v2390_v62 = vadd.f32 %v688_v61, %v686_v60 }
 0x40d   :  { %1597 = vmatmul.mubr.f32.vlgmr.msra.gmra.mrb[18].mxu0 %v2390_v62 }
 0x40e   :  { %1894 = vmatpush3.bf16.msra.mxu0 %v2119_v5  ;;  %1666 = vmatprep.mubr.msk.f32.mxu0 %vm2038_vm0, %v2039_v1 }
 0x40f   :  { %1895 = vmatprep.subr.bf16.mxu0 %v2037_v0 }
 0x412   :  { %1897 = vmatpush3.bf16.msra.mxu0 %v2131_v9 }
 0x413   :  { %1898 = vmatprep.subr.bf16.mxu0 %v2037_v0 }
 0x416   :  { %1900 = vmatpush3.bf16.msra.mxu0 %v2155_v15 }
 0x417   :  { %1901 = vmatprep.subr.bf16.mxu0 %v2037_v0 }
 0x41a   :  { %1903 = vmatpush3.bf16.msra.mxu0 %v2175_v20 }
 0x41b   :  { %1904 = vmatprep.subr.bf16.mxu0 %v2037_v0 }
 0x41e   :  { %1906 = vmatpush3.bf16.msra.mxu0 %v2193_v25 }
 0x41f   :  { %1907 = vmatprep.subr.bf16.mxu0 %v2037_v0 }
 0x422   :  { %1909 = vmatpush3.bf16.msra.mxu0 %v2208_v29 }
 0x423   :  { %1910 = vmatprep.subr.bf16.mxu0 %v2037_v0 }
 0x426   :  { %1912 = vmatpush3.bf16.msra.mxu0 %v2220_v32 }
 0x427   :  { %1913 = vmatprep.subr.bf16.mxu0 %v2037_v0 }
 0x42a   :  { %1915 = vmatpush3.bf16.msra.mxu0 %v2234_v35 }
 0x4e0   :  { %v761_v63 = vpop.f32.mrb[18].mxu0 }
 0x4e1   :  { %v762_v2 = vadd.f32 %v761_v63, %v302_v42  ;;  %v1598_v3 = vpop.f32.mrb[19].mxu0 }
 0x4e3   :  { %v1213_v4 = vmul.f32 -1.442695, %v762_v2 }
 0x4e5   :  { %1994 = vpow2.f32 %v1213_v4 }
 0x4ef   :  { %v1995_v6 = vpop.eup %1994 }
 0x4f0   :  { %v768_v8 = vadd.f32 1.0, %v1995_v6 }
 0x4f2   :  { %1996 = vrcp.f32 %v768_v8 }
 0x4fc   :  { %v1997_v10 = vpop.eup %1996 }
 0x4fd   :  { %v772_v16 = vsub.f32 1.0, %v1997_v10  ;;  %v771_v17 = vmul.f32 %v1997_v10, %v2390_v62 }
 0x4ff   :  { %v773_v18 = vmul.f32 %v772_v16, %v2294_v48 }
 0x501   :  { %v2414_v19 = vadd.f32 %v773_v18, %v771_v17 }
 0x503   :  { %1632 = vmatmul.mubr.f32.vlgmr.msra.gmra.mrb[6].mxu1 %v2414_v19 }
 0x504   :  { %1918 = vmatpush3.bf16.msra.mxu1 %v2119_v5  ;;  %1701 = vmatprep.mubr.msk.f32.mxu1 %vm2038_vm0, %v2039_v1  ;;  %v1040_v1 = vld [vmem:[#allocation5] sm:$0xff]  ;;  %v1041_v5 = vld [vmem:[#allocation5 + $0x8] sm:$0xff] }
 0x505   :  { %1919 = vmatprep.subr.bf16.mxu1 %v2037_v0 }
 0x508   :  { %1921 = vmatpush3.bf16.msra.mxu1 %v2131_v9  ;;  %v1940_v9 = vpack.c.bf16 %v1041_v5, %v1040_v1  ;;  %v317_v1 = vadd.f32 %v2334_v13, %v2303_v55 }
 0x509   :  { %1922 = vmatprep.subr.bf16.mxu1 %v2037_v0 }
 0x50a   :  { %1941 = vmatprep.subr.bf16.mxu0 %v1940_v9 }
 0x50c   :  { %1924 = vmatpush3.bf16.msra.mxu1 %v2155_v15  ;;  %v307_v15 = vadd.f32 %v2330_v11, %v2303_v55  ;;  %v1045_v11 = vld [vmem:[#allocation5 + $0x28] sm:$0xff] }
 0x50d   :  { %1925 = vmatprep.subr.bf16.mxu1 %v2037_v0  ;;  %v1948_v31 = vpack.c.bf16 %v1045_v11, %v1044_v28 }
 0x510   :  { %1927 = vmatpush3.bf16.msra.mxu1 %v2175_v20 }
 0x511   :  { %1928 = vmatprep.subr.bf16.mxu1 %v2037_v0 }
 0x514   :  { %1930 = vmatpush3.bf16.msra.mxu1 %v2193_v25 }
 0x515   :  { %1931 = vmatprep.subr.bf16.mxu1 %v2037_v0 }
 0x518   :  { %1933 = vmatpush3.bf16.msra.mxu1 %v2208_v29 }
 0x519   :  { %1934 = vmatprep.subr.bf16.mxu1 %v2037_v0 }
 0x51c   :  { %1936 = vmatpush3.bf16.msra.mxu1 %v2220_v32 }
 0x51d   :  { %1937 = vmatprep.subr.bf16.mxu1 %v2037_v0  ;;  %v1042_v0 = vld [vmem:[#allocation5 + $0x10] sm:$0xff] }
 0x51e   :  { %v1944_v27 = vpack.c.bf16 %v1043_v23, %v1042_v0 }
 0x520   :  { %1939 = vmatpush3.bf16.msra.mxu1 %v2234_v35 }
 0x5d6   :  { %v846_v20 = vpop.f32.mrb[6].mxu1 }
 0x5d7   :  { %v847_v25 = vadd.f32 %v846_v20, %v307_v15  ;;  %v1633_v48 = vpop.f32.mrb[7].mxu1 }
 0x5d9   :  { %v1214_v12 = vmul.f32 -1.442695, %v847_v25 }
 0x5db   :  { %1998 = vpow2.f32 %v1214_v12 }
 0x5e5   :  { %v1999_v29 = vpop.eup %1998 }
 0x5e6   :  { %v853_v21 = vadd.f32 1.0, %v1999_v29 }
 0x5e8   :  { %2000 = vrcp.f32 %v853_v21 }
 0x5f2   :  { %v2001_v32 = vpop.eup %2000 }
 0x5f3   :  { %v857_v22 = vsub.f32 1.0, %v2001_v32  ;;  %v856_v35 = vmul.f32 %v2001_v32, %v2414_v19 }
 0x5f5   :  { %v858_v24 = vmul.f32 %v857_v22, %v2292_v46  ;;  %v1956_v46 = vpack.c.bf16 %v1049_v38, %v1048_v37 }
 0x5f7   :  { %v859_v26 = vadd.f32 %v858_v24, %v856_v35 }
 0x5f9   :  { %1667 = vmatmul.mubr.f32.vlgmr.msra.gmra.mrb[20].mxu0 %v859_v26 }
 0x5fa   :  { %1943 = vmatpush3.bf16.msra.mxu0 %v1940_v9  ;;  %1736 = vmatprep.mubr.f32.mxu0 %v2307_v7  ;;  %v1964_v7 = vpack.c.bf16 %v1053_v45, %v1052_v43 }
 0x5fb   :  { %1945 = vmatprep.subr.bf16.mxu0 %v1944_v27 }
 0x5fe   :  { %1947 = vmatpush3.bf16.msra.mxu0 %v1944_v27 }
 0x5ff   :  { %1949 = vmatprep.subr.bf16.mxu0 %v1948_v31 }
 0x602   :  { %1951 = vmatpush3.bf16.msra.mxu0 %v1948_v31 }
 0x603   :  { %1953 = vmatprep.subr.bf16.mxu0 %v1952_v36 }
 0x606   :  { %1955 = vmatpush3.bf16.msra.mxu0 %v1952_v36 }
 0x607   :  { %1957 = vmatprep.subr.bf16.mxu0 %v1956_v46 }
 0x60a   :  { %1959 = vmatpush3.bf16.msra.mxu0 %v1956_v46 }
 0x60b   :  { %1961 = vmatprep.subr.bf16.mxu0 %v1960_v41 }
 0x60e   :  { %1963 = vmatpush3.bf16.msra.mxu0 %v1960_v41 }
 0x60f   :  { %1965 = vmatprep.subr.bf16.mxu0 %v1964_v7 }
 0x612   :  { %1967 = vmatpush3.bf16.msra.mxu0 %v1964_v7 }
 0x613   :  { %1969 = vmatprep.subr.bf16.mxu0 %v1968_v51 }
 0x616   :  { %1971 = vmatpush3.bf16.msra.mxu0 %v1968_v51 }
 0x619   :  { %1737 = vmatmul.mubr.f32.vlgmr.msra.gmra.mrb[22].mxu0 %v2341_v30 }
 0x61a   :  { %1739 = vmatprep.mubr.f32.mxu0 %v2365_v47  ;;  %v1217_v47 = vld [vmem:[%s2486_s7] ss:$0 sm:$0xff] }
 0x61d   :  { %1740 = vmatmul.mubr.f32.gmra.mrb[24].mxu0 %v2390_v62 }
 0x61e   :  { %1742 = vmatprep.mubr.f32.mxu0 %v2414_v19 }
 0x621   :  { %1743 = vmatmul.mubr.f32.gmra.mrb[26].mxu0 %v859_v26 }
 0x6cc   :  { %v931_v54 = vpop.f32.mrb[20].mxu0 }
 0x6cd   :  { %v932_v56 = vadd.f32 %v931_v54, %v312_v53  ;;  %v1668_v57 = vpop.f32.mrb[21].mxu0 }
 0x6cf   :  { %v1215_v58 = vmul.f32 -1.442695, %v932_v56 }
 0x6d1   :  { %2002 = vpow2.f32 %v1215_v58 }
 0x6db   :  { %v2003_v59 = vpop.eup %2002 }
 0x6dc   :  { %v938_v60 = vadd.f32 1.0, %v2003_v59 }
 0x6de   :  { %2004 = vrcp.f32 %v938_v60 }
 0x6e8   :  { %v2005_v61 = vpop.eup %2004 }
 0x6e9   :  { %v942_v30 = vsub.f32 1.0, %v2005_v61  ;;  %v941_v62 = vmul.f32 %v2005_v61, %v859_v26 }
 0x6eb   :  { %v943_v42 = vmul.f32 %v942_v30, %v2298_v52 }
 0x6ec   :  { %v1738_v63 = vpop.f32.mrb[22].mxu0 }
 0x6ed   :  { %v1135_v2 = vadd.f32 %v1738_v63, %v1217_v47  ;;  %v1129_v14 = vpop.f32.mrb[23].mxu0  ;;  %v944_v3 = vadd.f32 %v943_v42, %v941_v62 }
 0x6ee   :  { %v1130_v4 = vadd.f32 %v1217_v47, %v1129_v14 }
 0x6ef   :  { %1169 = vst [vmem:[%s2488_s9 + $0x8] sm:$0xff] %v1135_v2  ;;  %1702 = vmatmul.mubr.f32.vlgmr.msra.gmra.mrb[8].mxu1 %v944_v3  ;;  %1745 = vmatprep.mubr.f32.mxu0 %v944_v3 }
 0x6f0   :  { %1168 = vst [vmem:[%s2488_s9] sm:$0xff] %v1130_v4  ;;  %v1741_v6 = vpop.f32.mrb[24].mxu0 }
 0x6f1   :  { %v1145_v8 = vadd.f32 %v1741_v6, %v1217_v47  ;;  %v1139_v10 = vpop.f32.mrb[25].mxu0 }
 0x6f2   :  { %v1140_v16 = vadd.f32 %v1217_v47, %v1139_v10 }
 0x6f3   :  { %1171 = vst [vmem:[%s2488_s9 + $0x18] sm:$0xff] %v1145_v8 }
 0x6f4   :  { %1170 = vst [vmem:[%s2488_s9 + $0x10] sm:$0xff] %v1140_v16  ;;  %v1744_v52 = vpop.f32.mrb[26].mxu0 }
 0x6f5   :  { %v1155_v17 = vadd.f32 %v1744_v52, %v1217_v47  ;;  %v1149_v18 = vpop.f32.mrb[27].mxu0 }
 0x6f6   :  { %v1150_v19 = vadd.f32 %v1217_v47, %v1149_v18 }
 0x6f7   :  { %1173 = vst [vmem:[%s2488_s9 + $0x28] sm:$0xff] %v1155_v17 }
 0x6f8   :  { %1172 = vst [vmem:[%s2488_s9 + $0x20] sm:$0xff] %v1150_v19 }
 0x7c2   :  { %v1016_v5 = vpop.f32.mrb[8].mxu1 }
 0x7c3   :  { %v1017_v9 = vadd.f32 %v1016_v5, %v317_v1  ;;  %v1703_v15 = vpop.f32.mrb[9].mxu1 }
 0x7c5   :  { %v1216_v20 = vmul.f32 -1.442695, %v1017_v9 }
 0x7c7   :  { %2006 = vpow2.f32 %v1216_v20 }
 0x7d1   :  { %v2007_v25 = vpop.eup %2006 }
 0x7d2   :  { %v1023_v48 = vadd.f32 1.0, %v2007_v25 }
 0x7d4   :  { %2008 = vrcp.f32 %v1023_v48 }
 0x7de   :  { %v2009_v12 = vpop.eup %2008 }
 0x7df   :  { %v1027_v29 = vsub.f32 1.0, %v2009_v12  ;;  %v1026_v21 = vmul.f32 %v2009_v12, %v944_v3 }
 0x7e1   :  { %v1028_v32 = vmul.f32 %v1027_v29, %v2296_v50 }
 0x7e3   :  { %v1029_v22 = vadd.f32 %v1028_v32, %v1026_v21 }
 0x7e5   :  { %1746 = vmatmul.mubr.f32.gmra.mrb[28].mxu0 %v1029_v22  ;;  %1179 = vst [vmem:[%s2489_s10] sm:$0xff] %v1029_v22 }
 0x8b8   :  { %v1747_v55 = vpop.f32.mrb[28].mxu0 }
 0x8b9   :  { %v1165_v13 = vadd.f32 %v1747_v55, %v1217_v47  ;;  %v1159_v0 = vpop.f32.mrb[29].mxu0 }
 0x8ba   :  { %v1160_v23 = vadd.f32 %v1217_v47, %v1159_v0 }
 0x8bb   :  { %1175 = vst [vmem:[%s2488_s9 + $0x38] sm:$0xff] %v1165_v13 }
 0x8bc   :  { %1174 = vst [vmem:[%s2488_s9 + $0x30] sm:$0xff] %v1160_v23 }
 0x8bd   :  { %1188 = vsyncpa [#allocation6], 1 }

// kernel: minimal_rnn_forward.3
= control target key start
LH: loop header
LB: loop body
LE: loop exit
PB: predicated region body
PF: predicated region fallthrough
CT: control target
= control target key end

     0   :  { %16 = vsyncpa [#allocation6], 0  ;;  %s2701_s0 = inlined_call_operand.vmem [shape: f32[8,8,128], index: 0, kind: input, shape index: {}]   ;;  %s2702_s1 = inlined_call_operand.vmem [shape: f32[128,128], index: 1, kind: input, shape index: {}]   ;;  %s2703_s2 = inlined_call_operand.vmem [shape: f32[1,128], index: 2, kind: input, shape index: {}]   ;;  %s2704_s3 = inlined_call_operand.vmem [shape: f32[128,128], index: 3, kind: input, shape index: {}]   ;;  %s2705_s4 = inlined_call_operand.vmem [shape: f32[1,128], index: 4, kind: input, shape index: {}]   ;;  %s2706_s5 = inlined_call_operand.hbm [shape: f32[128,128], index: 5, kind: input, shape index: {}]   ;;  %s2707_s6 = inlined_call_operand.hbm [shape: f32[128,128], index: 6, kind: input, shape index: {}]   ;;  %s2708_s7 = inlined_call_operand.vmem [shape: f32[1,128], index: 7, kind: input, shape index: {}]   ;;  %s2709_s8 = inlined_call_operand.vmem [shape: f32[8,128], index: 8, kind: input, shape index: {}]   ;;  %s2710_s9 = inlined_call_operand.vmem [shape: f32[8,8,128], index: 9, kind: output, shape index: {0}]   ;;  %s2711_s10 = inlined_call_operand.vmem [shape: f32[8,128], index: 10, kind: output, shape index: {1}]  }
   0x1   :  { %17 = vsyncpa [#allocation8], 0  ;;  %s2208_s13 = smov [#allocation5]   ;;  %s2160_s17 = scalar_lea.hbm %s2706_s5, 2048 }
   0x2   :  { %s33_s14 = sshll.u32 %s2208_s13, 4  ;;  %p2161_p0 = scmp.ne.s32.totalorder %s2706_s5, %s2160_s17  ;;  %s34_s14 = int_to_ptr.vmem [resolvable:$true] %s33_s14 }
   0x3   :  { %p2164_p1 = scmp.lt.u32.totalorder %s2160_s17, %s2706_s5 }
   0x5   :  { %p2166_p2 = pnand %p2164_p1, %p2161_p0 }
   0x7   :  { %2169 = shalt.err (!%p2166_p2)
}
   0x8   :  { %s2170_s22 = scalar_lea.vmem %s34_s14, 2048  ;;  %p2175_p4 = scmp.lt.s32.totalorder %s34_s14, %s34_s14 }
   0x9   :  { %p2171_p3 = scmp.ne.s32.totalorder %s34_s14, %s2170_s22  ;;  %p2176_p5 = scmp.lt.s32.totalorder %s2170_s22, %s2170_s22 }
   0xb   :  { %p2177_p6 = por %p2176_p5, %p2175_p4 }
   0xd   :  { %p2178_p7 = pnand %p2177_p6, %p2171_p3 }
   0xf   :  { %2181 = shalt.err (!%p2178_p7)
}
  0x10   :  { %s2209_s23 = smov 128   ;;  %s2210_s24 = smov 8  }
  0x11   :  { %39 = dma.hbm_to_vmem [thread:$0]  %s2706_s5, 2048, %s34_s14, [#allocation6], %s2209_s23, %s2209_s23, %s2210_s24  }
  0x12   :  { %s2211_s27 = smov [#allocation7]   ;;  %s2182_s11 = scalar_lea.hbm %s2707_s6, 2048 }
  0x13   :  { %s45_s28 = sshll.u32 %s2211_s27, 4  ;;  %p2183_p8 = scmp.ne.s32.totalorder %s2707_s6, %s2182_s11  ;;  %s46_s28 = int_to_ptr.vmem [resolvable:$true] %s45_s28 }
  0x14   :  { %p2186_p9 = scmp.lt.u32.totalorder %s2182_s11, %s2707_s6 }
  0x16   :  { %p2188_p10 = pnand %p2186_p9, %p2183_p8 }
  0x18   :  { %2191 = shalt.err (!%p2188_p10)
}
  0x19   :  { %s2192_s17 = scalar_lea.vmem %s46_s28, 2048  ;;  %p2197_p12 = scmp.lt.s32.totalorder %s46_s28, %s46_s28 }
  0x1a   :  { %p2193_p11 = scmp.ne.s32.totalorder %s46_s28, %s2192_s17  ;;  %p2198_p13 = scmp.lt.s32.totalorder %s2192_s17, %s2192_s17 }
  0x1c   :  { %p2199_p0 = por %p2198_p13, %p2197_p12 }
  0x1e   :  { %p2200_p1 = pnand %p2199_p0, %p2193_p11 }
  0x20   :  { %2203 = shalt.err (!%p2200_p1)
}
  0x21   :  { %51 = dma.hbm_to_vmem [thread:$0]  %s2707_s6, 2048, %s46_s28, [#allocation8], %s2209_s23, %s2209_s23, %s2210_s24  }
  0x22   :  { %2204 = dma.done.wait [#allocation6], 2048  }
  0x23   :  { %2205 = vsyncadd [#allocation6], 4294965248 }
  0x24   :  { %2206 = dma.done.wait [#allocation8], 2048  }
  0x25   :  { %2207 = vsyncadd [#allocation8], 4294965248  ;;  %v2212_v0 = vmov 0.0|0.0   ;;  %vm2213_vm0 = vmmov 0   ;;  %v2214_v1 = vmov 0.0   ;;  %v76_v2 = vld [vmem:[%s2702_s1] sm:$0xff] }
  0x26   :  { %1897 = vmatprep.subr.bf16.mxu0 %v2212_v0  ;;  %1541 = vmatprep.mubr.msk.f32.mxu0 %vm2213_vm0, %v2214_v1  ;;  %v77_v3 = vld [vmem:[%s2702_s1 + $0x8] sm:$0xff]  ;;  %v78_v4 = vld [vmem:[%s2702_s1 + $0x10] sm:$0xff]  ;;  %v79_v6 = vld [vmem:[%s2702_s1 + $0x18] sm:$0xff] }
  0x27   :  { %v1833_v5 = vpack.c.bf16 %v77_v3, %v76_v2  ;;  %v1837_v7 = vpack.c.bf16 %v79_v6, %v78_v4  ;;  %v80_v8 = vld [vmem:[%s2702_s1 + $0x20] sm:$0xff]  ;;  %v81_v9 = vld [vmem:[%s2702_s1 + $0x28] sm:$0xff]  ;;  %v82_v12 = vld [vmem:[%s2702_s1 + $0x30] sm:$0xff] }
  0x28   :  { %v1841_v10 = vpack.c.bf16 %v81_v9, %v80_v8  ;;  %v2318_v11 = vld [vmem:[%s2701_s0] sm:$0xff]  ;;  %v83_v13 = vld [vmem:[%s2702_s1 + $0x38] sm:$0xff]  ;;  %v349_v15 = vld [vmem:[#allocation5 + $0x8] sm:$0xff] }
  0x29   :  { %1834 = vmatprep.subr.bf16.mxu1 %v1833_v5  ;;  %1453 = vmatprep.mubr.f32.mxu1 %v2318_v11  ;;  %v348_v14 = vld [vmem:[#allocation5] sm:$0xff]  ;;  %v350_v17 = vld [vmem:[#allocation5 + $0x10] sm:$0xff]  ;;  %v351_v18 = vld [vmem:[#allocation5 + $0x18] sm:$0xff]  ;;  %v1845_v19 = vpack.c.bf16 %v83_v13, %v82_v12 }
  0x2a   :  { %1836 = vmatpush3.bf16.msra.mxu1 %v1833_v5  ;;  %v2327_v16 = vpack.c.bf16 %v349_v15, %v348_v14  ;;  %v84_v20 = vld [vmem:[%s2702_s1 + $0x40] sm:$0xff]  ;;  %v85_v21 = vld [vmem:[%s2702_s1 + $0x48] sm:$0xff]  ;;  %v2336_v22 = vpack.c.bf16 %v351_v18, %v350_v17  ;;  %v86_v26 = vld [vmem:[%s2702_s1 + $0x50] sm:$0xff] }
  0x2b   :  { %1838 = vmatprep.subr.bf16.mxu1 %v1837_v7  ;;  %v352_v23 = vld [vmem:[#allocation5 + $0x20] sm:$0xff]  ;;  %v353_v24 = vld [vmem:[#allocation5 + $0x28] sm:$0xff]  ;;  %v1849_v25 = vpack.c.bf16 %v85_v21, %v84_v20  ;;  %v87_v27 = vld [vmem:[%s2702_s1 + $0x58] sm:$0xff] }
  0x2c   :  { %1899 = vmatpush3.bf16.msra.mxu0 %v2327_v16  ;;  %v2346_v28 = vpack.c.bf16 %v353_v24, %v352_v23  ;;  %v354_v29 = vld [vmem:[#allocation5 + $0x30] sm:$0xff]  ;;  %v355_v30 = vld [vmem:[#allocation5 + $0x38] sm:$0xff]  ;;  %v1853_v31 = vpack.c.bf16 %v87_v27, %v86_v26  ;;  %v88_v32 = vld [vmem:[%s2702_s1 + $0x60] sm:$0xff] }
  0x2d   :  { %1900 = vmatprep.subr.bf16.mxu0 %v2212_v0  ;;  %v89_v33 = vld [vmem:[%s2702_s1 + $0x68] sm:$0xff]  ;;  %v2356_v34 = vpack.c.bf16 %v355_v30, %v354_v29  ;;  %v356_v35 = vld [vmem:[#allocation5 + $0x40] sm:$0xff]  ;;  %v90_v38 = vld [vmem:[%s2702_s1 + $0x70] sm:$0xff] }
  0x2e   :  { %1840 = vmatpush3.bf16.msra.mxu1 %v1837_v7  ;;  %v357_v36 = vld [vmem:[#allocation5 + $0x48] sm:$0xff]  ;;  %v1857_v37 = vpack.c.bf16 %v89_v33, %v88_v32  ;;  %v91_v39 = vld [vmem:[%s2702_s1 + $0x78] sm:$0xff]  ;;  %v358_v41 = vld [vmem:[#allocation5 + $0x50] sm:$0xff] }
  0x2f   :  { %1842 = vmatprep.subr.bf16.mxu1 %v1841_v10  ;;  %v2366_v40 = vpack.c.bf16 %v357_v36, %v356_v35  ;;  %v359_v42 = vld [vmem:[#allocation5 + $0x58] sm:$0xff]  ;;  %v1861_v43 = vpack.c.bf16 %v91_v39, %v90_v38  ;;  %v204_v44 = vld [vmem:[%s2704_s3] sm:$0xff]  ;;  %v205_v45 = vld [vmem:[%s2704_s3 + $0x8] sm:$0xff] }
  0x30   :  { %1902 = vmatpush3.bf16.msra.mxu0 %v2336_v22  ;;  %v2376_v46 = vpack.c.bf16 %v359_v42, %v358_v41  ;;  %v360_v47 = vld [vmem:[#allocation5 + $0x60] sm:$0xff]  ;;  %v361_v48 = vld [vmem:[#allocation5 + $0x68] sm:$0xff]  ;;  %v1865_v49 = vpack.c.bf16 %v205_v45, %v204_v44  ;;  %v206_v50 = vld [vmem:[%s2704_s3 + $0x10] sm:$0xff] }
  0x31   :  { %1903 = vmatprep.subr.bf16.mxu0 %v2212_v0  ;;  %v207_v51 = vld [vmem:[%s2704_s3 + $0x18] sm:$0xff]  ;;  %v2386_v52 = vpack.c.bf16 %v361_v48, %v360_v47  ;;  %v362_v53 = vld [vmem:[#allocation5 + $0x70] sm:$0xff]  ;;  %v2392_v55 = vld [vmem:[%s2701_s0 + $0x8] sm:$0xff] }
  0x32   :  { %1844 = vmatpush3.bf16.msra.mxu1 %v1841_v10  ;;  %v363_v54 = vld [vmem:[#allocation5 + $0x78] sm:$0xff]  ;;  %v1869_v56 = vpack.c.bf16 %v207_v51, %v206_v50  ;;  %v2397_v57 = vld [vmem:[%s2701_s0 + $0x10] sm:$0xff]  ;;  %v208_v58 = vld [vmem:[%s2704_s3 + $0x20] sm:$0xff] }
  0x33   :  { %1846 = vmatprep.subr.bf16.mxu1 %v1845_v19  ;;  %v209_v59 = vld [vmem:[%s2704_s3 + $0x28] sm:$0xff]  ;;  %v2406_v60 = vpack.c.bf16 %v363_v54, %v362_v53  ;;  %v2414_v61 = vld [vmem:[%s2701_s0 + $0x18] sm:$0xff]  ;;  %v2419_v63 = vld [vmem:[%s2701_s0 + $0x20] sm:$0xff] }
  0x34   :  { %1905 = vmatpush3.bf16.msra.mxu0 %v2346_v28  ;;  %v1873_v62 = vpack.c.bf16 %v209_v59, %v208_v58  ;;  %v210_v2 = vld [vmem:[%s2704_s3 + $0x30] sm:$0xff]  ;;  %v211_v3 = vld [vmem:[%s2704_s3 + $0x38] sm:$0xff]  ;;  %v2431_v4 = vld [vmem:[%s2709_s8] sm:$0xff] }
  0x35   :  { %1906 = vmatprep.subr.bf16.mxu0 %v2212_v0  ;;  %v73_v5 = vld [vmem:[%s2701_s0 + $0x28] sm:$0xff]  ;;  %v1877_v6 = vpack.c.bf16 %v211_v3, %v210_v2  ;;  %v74_v7 = vld [vmem:[%s2701_s0 + $0x30] sm:$0xff]  ;;  %v212_v8 = vld [vmem:[%s2704_s3 + $0x40] sm:$0xff] }
  0x36   :  { %1848 = vmatpush3.bf16.msra.mxu1 %v1845_v19  ;;  %v213_v9 = vld [vmem:[%s2704_s3 + $0x48] sm:$0xff]  ;;  %v75_v10 = vld [vmem:[%s2701_s0 + $0x38] sm:$0xff]  ;;  %v214_v13 = vld [vmem:[%s2704_s3 + $0x50] sm:$0xff] }
  0x37   :  { %1850 = vmatprep.subr.bf16.mxu1 %v1849_v25  ;;  %v1881_v12 = vpack.c.bf16 %v213_v9, %v212_v8  ;;  %v215_v14 = vld [vmem:[%s2704_s3 + $0x58] sm:$0xff]  ;;  %v216_v17 = vld [vmem:[%s2704_s3 + $0x60] sm:$0xff]  ;;  %v217_v18 = vld [vmem:[%s2704_s3 + $0x68] sm:$0xff] }
  0x38   :  { %1908 = vmatpush3.bf16.msra.mxu0 %v2356_v34  ;;  %v1885_v15 = vpack.c.bf16 %v215_v14, %v214_v13  ;;  %v1889_v19 = vpack.c.bf16 %v217_v18, %v216_v17  ;;  %v219_v20 = vld [vmem:[%s2704_s3 + $0x78] sm:$0xff]  ;;  %v1202_v23 = vld [vmem:[%s2703_s2] ss:$0 sm:$0xff] }
  0x39   :  { %1909 = vmatprep.subr.bf16.mxu0 %v2212_v0  ;;  %v1203_v44 = vld [vmem:[%s2705_s4] ss:$0 sm:$0xff] }
  0x3a   :  { %1852 = vmatpush3.bf16.msra.mxu1 %v1849_v25 }
  0x3b   :  { %1854 = vmatprep.subr.bf16.mxu1 %v1853_v31 }
  0x3c   :  { %1911 = vmatpush3.bf16.msra.mxu0 %v2366_v40 }
  0x3d   :  { %1912 = vmatprep.subr.bf16.mxu0 %v2212_v0 }
  0x3e   :  { %1856 = vmatpush3.bf16.msra.mxu1 %v1853_v31 }
  0x3f   :  { %1858 = vmatprep.subr.bf16.mxu1 %v1857_v37 }
  0x40   :  { %1914 = vmatpush3.bf16.msra.mxu0 %v2376_v46 }
  0x41   :  { %1915 = vmatprep.subr.bf16.mxu0 %v2212_v0 }
  0x42   :  { %1860 = vmatpush3.bf16.msra.mxu1 %v1857_v37 }
  0x43   :  { %1862 = vmatprep.subr.bf16.mxu1 %v1861_v43 }
  0x44   :  { %1917 = vmatpush3.bf16.msra.mxu0 %v2386_v52 }
  0x45   :  { %1918 = vmatprep.subr.bf16.mxu0 %v2212_v0 }
  0x46   :  { %1864 = vmatpush3.bf16.msra.mxu1 %v1861_v43 }
  0x47   :  { %1866 = vmatprep.subr.bf16.mxu1 %v1865_v49 }
  0x48   :  { %1920 = vmatpush3.bf16.msra.mxu0 %v2406_v60 }
  0x49   :  { %1454 = vmatmul.mubr.f32.vlgmr.msra.gmra.mrb[0].mxu1 %v2392_v55  ;;  %1945 = vmatprep.subr.bf16.mxu0 %v2212_v0 }
  0x4a   :  { %1868 = vmatpush3.bf16.msra.mxu1 %v1865_v49  ;;  %1456 = vmatprep.mubr.f32.mxu1 %v2397_v57 }
  0x4b   :  { %1870 = vmatprep.subr.bf16.mxu1 %v1869_v56  ;;  %1542 = vmatmul.mubr.f32.vlgmr.msra.gmra.mrb[0].mxu0 %v2431_v4 }
  0x4c   :  { %1947 = vmatpush3.bf16.msra.mxu0 %v2327_v16  ;;  %1611 = vmatprep.mubr.msk.f32.mxu0 %vm2213_vm0, %v2214_v1 }
  0x4d   :  { %1457 = vmatmul.mubr.f32.gmra.mrb[2].mxu1 %v2414_v61  ;;  %1948 = vmatprep.subr.bf16.mxu0 %v2212_v0 }
  0x4e   :  { %1872 = vmatpush3.bf16.msra.mxu1 %v1869_v56  ;;  %1459 = vmatprep.mubr.f32.mxu1 %v2419_v63 }
  0x4f   :  { %1874 = vmatprep.subr.bf16.mxu1 %v1873_v62 }
  0x50   :  { %1950 = vmatpush3.bf16.msra.mxu0 %v2336_v22 }
  0x51   :  { %1460 = vmatmul.mubr.f32.gmra.mrb[4].mxu1 %v73_v5  ;;  %1951 = vmatprep.subr.bf16.mxu0 %v2212_v0 }
  0x52   :  { %1876 = vmatpush3.bf16.msra.mxu1 %v1873_v62  ;;  %1462 = vmatprep.mubr.f32.mxu1 %v74_v7 }
  0x53   :  { %1878 = vmatprep.subr.bf16.mxu1 %v1877_v6 }
  0x54   :  { %1953 = vmatpush3.bf16.msra.mxu0 %v2346_v28 }
  0x55   :  { %1463 = vmatmul.mubr.f32.gmra.mrb[6].mxu1 %v75_v10  ;;  %1954 = vmatprep.subr.bf16.mxu0 %v2212_v0 }
  0x56   :  { %1880 = vmatpush3.bf16.msra.mxu1 %v1877_v6  ;;  %1497 = vmatprep.mubr.f32.mxu1 %v2318_v11  ;;  %v218_v11 = vld [vmem:[%s2704_s3 + $0x70] sm:$0xff] }
  0x57   :  { %1882 = vmatprep.subr.bf16.mxu1 %v1881_v12  ;;  %v1893_v21 = vpack.c.bf16 %v219_v20, %v218_v11 }
  0x58   :  { %1956 = vmatpush3.bf16.msra.mxu0 %v2356_v34 }
  0x59   :  { %1957 = vmatprep.subr.bf16.mxu0 %v2212_v0 }
  0x5a   :  { %1884 = vmatpush3.bf16.msra.mxu1 %v1881_v12 }
  0x5b   :  { %1886 = vmatprep.subr.bf16.mxu1 %v1885_v15 }
  0x5c   :  { %1959 = vmatpush3.bf16.msra.mxu0 %v2366_v40 }
  0x5d   :  { %1960 = vmatprep.subr.bf16.mxu0 %v2212_v0 }
  0x5e   :  { %1888 = vmatpush3.bf16.msra.mxu1 %v1885_v15 }
  0x5f   :  { %1890 = vmatprep.subr.bf16.mxu1 %v1889_v19 }
  0x60   :  { %1962 = vmatpush3.bf16.msra.mxu0 %v2376_v46 }
  0x61   :  { %1963 = vmatprep.subr.bf16.mxu0 %v2212_v0 }
  0x62   :  { %1892 = vmatpush3.bf16.msra.mxu1 %v1889_v19 }
  0x63   :  { %1894 = vmatprep.subr.bf16.mxu1 %v1893_v21 }
  0x64   :  { %1965 = vmatpush3.bf16.msra.mxu0 %v2386_v52 }
  0x65   :  { %1966 = vmatprep.subr.bf16.mxu0 %v2212_v0 }
  0x66   :  { %1896 = vmatpush3.bf16.msra.mxu1 %v1893_v21 }
  0x67   :  { %1921 = vmatprep.subr.bf16.mxu1 %v2212_v0 }
  0x68   :  { %1968 = vmatpush3.bf16.msra.mxu0 %v2406_v60 }
  0x69   :  { %1498 = vmatmul.mubr.f32.vlgmr.msra.gmra.mrb[8].mxu1 %v2392_v55  ;;  %1993 = vmatprep.subr.bf16.mxu0 %v2212_v0 }
  0x6a   :  { %1923 = vmatpush3.bf16.msra.mxu1 %v2327_v16  ;;  %1500 = vmatprep.mubr.f32.mxu1 %v2397_v57 }
  0x6b   :  { %1924 = vmatprep.subr.bf16.mxu1 %v2212_v0 }
  0x6d   :  { %1501 = vmatmul.mubr.f32.gmra.mrb[10].mxu1 %v2414_v61 }
  0x6e   :  { %1926 = vmatpush3.bf16.msra.mxu1 %v2336_v22  ;;  %1503 = vmatprep.mubr.f32.mxu1 %v2419_v63 }
  0x6f   :  { %1927 = vmatprep.subr.bf16.mxu1 %v2212_v0 }
  0x71   :  { %1504 = vmatmul.mubr.f32.gmra.mrb[12].mxu1 %v73_v5 }
  0x72   :  { %1929 = vmatpush3.bf16.msra.mxu1 %v2346_v28  ;;  %1506 = vmatprep.mubr.f32.mxu1 %v74_v7 }
  0x73   :  { %1930 = vmatprep.subr.bf16.mxu1 %v2212_v0 }
  0x75   :  { %1507 = vmatmul.mubr.f32.gmra.mrb[14].mxu1 %v75_v10 }
  0x76   :  { %1932 = vmatpush3.bf16.msra.mxu1 %v2356_v34  ;;  %1576 = vmatprep.mubr.msk.f32.mxu1 %vm2213_vm0, %v2214_v1 }
  0x77   :  { %1933 = vmatprep.subr.bf16.mxu1 %v2212_v0 }
  0x7a   :  { %1935 = vmatpush3.bf16.msra.mxu1 %v2366_v40 }
  0x7b   :  { %1936 = vmatprep.subr.bf16.mxu1 %v2212_v0 }
  0x7e   :  { %1938 = vmatpush3.bf16.msra.mxu1 %v2376_v46 }
  0x7f   :  { %1939 = vmatprep.subr.bf16.mxu1 %v2212_v0 }
  0x82   :  { %1941 = vmatpush3.bf16.msra.mxu1 %v2386_v52 }
  0x83   :  { %1942 = vmatprep.subr.bf16.mxu1 %v2212_v0 }
  0x86   :  { %1944 = vmatpush3.bf16.msra.mxu1 %v2406_v60 }
  0x87   :  { %1969 = vmatprep.subr.bf16.mxu1 %v2212_v0 }
 0x11c   :  { %v1455_v24 = vpop.f32.mrb[0].mxu1 }
 0x11d   :  { %v2515_v25 = vadd.f32 %v1455_v24, %v1202_v23  ;;  %v165_v26 = vpop.f32.mrb[1].mxu1 }
 0x11e   :  { %v433_v32 = vpop.f32.mrb[0].mxu0  ;;  %v166_v8 = vadd.f32 %v1202_v23, %v165_v26 }
 0x11f   :  { %v1543_v33 = vpop.f32.mrb[1].mxu0 }
 0x120   :  { %v1458_v27 = vpop.f32.mrb[2].mxu1 }
 0x121   :  { %v2517_v29 = vadd.f32 %v1458_v27, %v1202_v23  ;;  %v175_v30 = vpop.f32.mrb[3].mxu1 }
 0x122   :  { %v2519_v31 = vadd.f32 %v1202_v23, %v175_v30 }
 0x124   :  { %v1461_v35 = vpop.f32.mrb[4].mxu1 }
 0x125   :  { %v2521_v36 = vadd.f32 %v1461_v35, %v1202_v23  ;;  %v185_v37 = vpop.f32.mrb[5].mxu1 }
 0x126   :  { %v2523_v38 = vadd.f32 %v1202_v23, %v185_v37 }
 0x128   :  { %v1464_v39 = vpop.f32.mrb[6].mxu1 }
 0x129   :  { %v2525_v41 = vadd.f32 %v1464_v39, %v1202_v23  ;;  %v195_v42 = vpop.f32.mrb[7].mxu1 }
 0x12a   :  { %v2527_v43 = vadd.f32 %v1202_v23, %v195_v42 }
 0x13c   :  { %v1499_v45 = vpop.f32.mrb[8].mxu1 }
 0x13d   :  { %v299_v47 = vadd.f32 %v1499_v45, %v1203_v44  ;;  %v293_v48 = vpop.f32.mrb[9].mxu1 }
 0x13e   :  { %v294_v49 = vadd.f32 %v1203_v44, %v293_v48 }
 0x140   :  { %v434_v50 = vadd.f32 %v433_v32, %v294_v49  ;;  %v1502_v51 = vpop.f32.mrb[10].mxu1 }
 0x141   :  { %v2532_v53 = vadd.f32 %v1502_v51, %v1203_v44  ;;  %v303_v54 = vpop.f32.mrb[11].mxu1 }
 0x142   :  { %v1204_v55 = vmul.f32 -1.442695, %v434_v50  ;;  %v2534_v56 = vadd.f32 %v1203_v44, %v303_v54 }
 0x144   :  { %2128 = vpow2.f32 %v1204_v55  ;;  %v1505_v57 = vpop.f32.mrb[12].mxu1 }
 0x145   :  { %v2536_v58 = vadd.f32 %v1505_v57, %v1203_v44  ;;  %v313_v59 = vpop.f32.mrb[13].mxu1 }
 0x146   :  { %v2538_v61 = vadd.f32 %v1203_v44, %v313_v59 }
 0x148   :  { %v1508_v62 = vpop.f32.mrb[14].mxu1 }
 0x149   :  { %v2540_v63 = vadd.f32 %v1508_v62, %v1203_v44  ;;  %v323_v2 = vpop.f32.mrb[15].mxu1 }
 0x14a   :  { %v2542_v3 = vadd.f32 %v1203_v44, %v323_v2 }
 0x14e   :  { %v2129_v5 = vpop.eup %2128 }
 0x14f   :  { %v440_v6 = vadd.f32 1.0, %v2129_v5 }
 0x151   :  { %2130 = vrcp.f32 %v440_v6 }
 0x15b   :  { %v2131_v7 = vpop.eup %2130 }
 0x15c   :  { %v444_v9 = vsub.f32 1.0, %v2131_v7  ;;  %v443_v10 = vmul.f32 %v2131_v7, %v2431_v4 }
 0x15e   :  { %v445_v12 = vmul.f32 %v444_v9, %v166_v8 }
 0x160   :  { %v2545_v13 = vadd.f32 %v445_v12, %v443_v10 }
 0x162   :  { %1577 = vmatmul.mubr.f32.vlgmr.msra.gmra.mrb[16].mxu1 %v2545_v13 }
 0x163   :  { %1971 = vmatpush3.bf16.msra.mxu1 %v2327_v16  ;;  %1646 = vmatprep.mubr.msk.f32.mxu1 %vm2213_vm0, %v2214_v1 }
 0x164   :  { %1972 = vmatprep.subr.bf16.mxu1 %v2212_v0 }
 0x167   :  { %1974 = vmatpush3.bf16.msra.mxu1 %v2336_v22 }
 0x168   :  { %1975 = vmatprep.subr.bf16.mxu1 %v2212_v0 }
 0x16b   :  { %1977 = vmatpush3.bf16.msra.mxu1 %v2346_v28 }
 0x16c   :  { %1978 = vmatprep.subr.bf16.mxu1 %v2212_v0 }
 0x16f   :  { %1980 = vmatpush3.bf16.msra.mxu1 %v2356_v34 }
 0x170   :  { %1981 = vmatprep.subr.bf16.mxu1 %v2212_v0 }
 0x173   :  { %1983 = vmatpush3.bf16.msra.mxu1 %v2366_v40 }
 0x174   :  { %1984 = vmatprep.subr.bf16.mxu1 %v2212_v0 }
 0x177   :  { %1986 = vmatpush3.bf16.msra.mxu1 %v2376_v46 }
 0x178   :  { %1987 = vmatprep.subr.bf16.mxu1 %v2212_v0 }
 0x17b   :  { %1989 = vmatpush3.bf16.msra.mxu1 %v2386_v52 }
 0x17c   :  { %1990 = vmatprep.subr.bf16.mxu1 %v2212_v0 }
 0x17f   :  { %1992 = vmatpush3.bf16.msra.mxu1 %v2406_v60 }
 0x180   :  { %2017 = vmatprep.subr.bf16.mxu1 %v2212_v0 }
 0x235   :  { %v518_v4 = vpop.f32.mrb[16].mxu1 }
 0x236   :  { %v519_v14 = vadd.f32 %v518_v4, %v299_v47  ;;  %v1578_v15 = vpop.f32.mrb[17].mxu1 }
 0x238   :  { %v1205_v17 = vmul.f32 -1.442695, %v519_v14  ;;  %v1055_v14 = vld [vmem:[#allocation7 + $0x18] sm:$0xff] }
 0x23a   :  { %2132 = vpow2.f32 %v1205_v17 }
 0x244   :  { %v2133_v18 = vpop.eup %2132 }
 0x245   :  { %v525_v19 = vadd.f32 1.0, %v2133_v18  ;;  %v1056_v18 = vld [vmem:[#allocation7 + $0x20] sm:$0xff] }
 0x247   :  { %2134 = vrcp.f32 %v525_v19  ;;  %v1057_v19 = vld [vmem:[#allocation7 + $0x28] sm:$0xff] }
 0x251   :  { %v2135_v11 = vpop.eup %2134 }
 0x252   :  { %v529_v20 = vsub.f32 1.0, %v2135_v11  ;;  %v528_v21 = vmul.f32 %v2135_v11, %v2545_v13  ;;  %v1058_v11 = vld [vmem:[#allocation7 + $0x30] sm:$0xff] }
 0x254   :  { %v530_v23 = vmul.f32 %v529_v20, %v2515_v25  ;;  %v1059_v20 = vld [vmem:[#allocation7 + $0x38] sm:$0xff] }
 0x256   :  { %v2568_v24 = vadd.f32 %v530_v23, %v528_v21  ;;  %v2101_v21 = vpack.c.bf16 %v1059_v20, %v1058_v11  ;;  %v1060_v23 = vld [vmem:[#allocation7 + $0x40] sm:$0xff] }
 0x258   :  { %1612 = vmatmul.mubr.f32.vlgmr.msra.gmra.mrb[2].mxu0 %v2568_v24 }
 0x259   :  { %1995 = vmatpush3.bf16.msra.mxu0 %v2327_v16  ;;  %1681 = vmatprep.mubr.msk.f32.mxu0 %vm2213_vm0, %v2214_v1 }
 0x25a   :  { %1996 = vmatprep.subr.bf16.mxu0 %v2212_v0 }
 0x25d   :  { %1998 = vmatpush3.bf16.msra.mxu0 %v2336_v22 }
 0x25e   :  { %1999 = vmatprep.subr.bf16.mxu0 %v2212_v0 }
 0x261   :  { %2001 = vmatpush3.bf16.msra.mxu0 %v2346_v28 }
 0x262   :  { %2002 = vmatprep.subr.bf16.mxu0 %v2212_v0 }
 0x265   :  { %2004 = vmatpush3.bf16.msra.mxu0 %v2356_v34 }
 0x266   :  { %2005 = vmatprep.subr.bf16.mxu0 %v2212_v0 }
 0x269   :  { %2007 = vmatpush3.bf16.msra.mxu0 %v2366_v40 }
 0x26a   :  { %2008 = vmatprep.subr.bf16.mxu0 %v2212_v0 }
 0x26d   :  { %2010 = vmatpush3.bf16.msra.mxu0 %v2376_v46 }
 0x26e   :  { %2011 = vmatprep.subr.bf16.mxu0 %v2212_v0 }
 0x271   :  { %2013 = vmatpush3.bf16.msra.mxu0 %v2386_v52 }
 0x272   :  { %2014 = vmatprep.subr.bf16.mxu0 %v2212_v0 }
 0x275   :  { %2016 = vmatpush3.bf16.msra.mxu0 %v2406_v60 }
 0x276   :  { %2041 = vmatprep.subr.bf16.mxu0 %v2212_v0 }
 0x32b   :  { %v603_v25 = vpop.f32.mrb[2].mxu0 }
 0x32c   :  { %v604_v26 = vadd.f32 %v603_v25, %v2534_v56  ;;  %v1613_v27 = vpop.f32.mrb[3].mxu0  ;;  %v1061_v25 = vld [vmem:[#allocation7 + $0x48] sm:$0xff] }
 0x32d   :  { %v1063_v27 = vld [vmem:[#allocation7 + $0x58] sm:$0xff] }
 0x32e   :  { %v1206_v30 = vmul.f32 -1.442695, %v604_v26  ;;  %v1062_v26 = vld [vmem:[#allocation7 + $0x50] sm:$0xff] }
 0x330   :  { %2136 = vpow2.f32 %v1206_v30  ;;  %v2109_v30 = vpack.c.bf16 %v1063_v27, %v1062_v26 }
 0x33a   :  { %v2137_v32 = vpop.eup %2136 }
 0x33b   :  { %v610_v33 = vadd.f32 1.0, %v2137_v32  ;;  %v1064_v32 = vld [vmem:[#allocation7 + $0x60] sm:$0xff] }
 0x33d   :  { %2138 = vrcp.f32 %v610_v33  ;;  %v1065_v33 = vld [vmem:[#allocation7 + $0x68] sm:$0xff] }
 0x347   :  { %v2139_v35 = vpop.eup %2138 }
 0x348   :  { %v614_v37 = vsub.f32 1.0, %v2139_v35  ;;  %v613_v39 = vmul.f32 %v2139_v35, %v2568_v24  ;;  %v1066_v35 = vld [vmem:[#allocation7 + $0x70] sm:$0xff] }
 0x34a   :  { %v615_v42 = vmul.f32 %v614_v37, %v2519_v31  ;;  %v1067_v37 = vld [vmem:[#allocation7 + $0x78] sm:$0xff] }
 0x34c   :  { %v2592_v44 = vadd.f32 %v615_v42, %v613_v39  ;;  %v2117_v39 = vpack.c.bf16 %v1067_v37, %v1066_v35 }
 0x34e   :  { %1647 = vmatmul.mubr.f32.vlgmr.msra.gmra.mrb[18].mxu1 %v2592_v44 }
 0x34f   :  { %2019 = vmatpush3.bf16.msra.mxu1 %v2327_v16  ;;  %1716 = vmatprep.mubr.msk.f32.mxu1 %vm2213_vm0, %v2214_v1 }
 0x350   :  { %2020 = vmatprep.subr.bf16.mxu1 %v2212_v0 }
 0x353   :  { %2022 = vmatpush3.bf16.msra.mxu1 %v2336_v22 }
 0x354   :  { %2023 = vmatprep.subr.bf16.mxu1 %v2212_v0 }
 0x357   :  { %2025 = vmatpush3.bf16.msra.mxu1 %v2346_v28 }
 0x358   :  { %2026 = vmatprep.subr.bf16.mxu1 %v2212_v0 }
 0x35b   :  { %2028 = vmatpush3.bf16.msra.mxu1 %v2356_v34 }
 0x35c   :  { %2029 = vmatprep.subr.bf16.mxu1 %v2212_v0 }
 0x35f   :  { %2031 = vmatpush3.bf16.msra.mxu1 %v2366_v40 }
 0x360   :  { %2032 = vmatprep.subr.bf16.mxu1 %v2212_v0 }
 0x363   :  { %2034 = vmatpush3.bf16.msra.mxu1 %v2376_v46 }
 0x364   :  { %2035 = vmatprep.subr.bf16.mxu1 %v2212_v0 }
 0x367   :  { %2037 = vmatpush3.bf16.msra.mxu1 %v2386_v52 }
 0x368   :  { %2038 = vmatprep.subr.bf16.mxu1 %v2212_v0 }
 0x36b   :  { %2040 = vmatpush3.bf16.msra.mxu1 %v2406_v60 }
 0x36c   :  { %2065 = vmatprep.subr.bf16.mxu1 %v2212_v0 }
 0x421   :  { %v688_v31 = vpop.f32.mrb[18].mxu1 }
 0x422   :  { %v689_v45 = vadd.f32 %v688_v31, %v2532_v53  ;;  %v1648_v47 = vpop.f32.mrb[19].mxu1 }
 0x424   :  { %v1207_v48 = vmul.f32 -1.442695, %v689_v45 }
 0x426   :  { %2140 = vpow2.f32 %v1207_v48 }
 0x430   :  { %v2141_v49 = vpop.eup %2140 }
 0x431   :  { %v695_v50 = vadd.f32 1.0, %v2141_v49 }
 0x433   :  { %2142 = vrcp.f32 %v695_v50 }
 0x43d   :  { %v2143_v51 = vpop.eup %2142 }
 0x43e   :  { %v699_v54 = vsub.f32 1.0, %v2143_v51  ;;  %v698_v55 = vmul.f32 %v2143_v51, %v2592_v44 }
 0x440   :  { %v700_v56 = vmul.f32 %v699_v54, %v2517_v29 }
 0x442   :  { %v2616_v57 = vadd.f32 %v700_v56, %v698_v55 }
 0x444   :  { %1682 = vmatmul.mubr.f32.vlgmr.msra.gmra.mrb[4].mxu0 %v2616_v57 }
 0x445   :  { %2043 = vmatpush3.bf16.msra.mxu0 %v2327_v16  ;;  %1751 = vmatprep.mubr.msk.f32.mxu0 %vm2213_vm0, %v2214_v1 }
 0x446   :  { %2044 = vmatprep.subr.bf16.mxu0 %v2212_v0 }
 0x449   :  { %2046 = vmatpush3.bf16.msra.mxu0 %v2336_v22 }
 0x44a   :  { %2047 = vmatprep.subr.bf16.mxu0 %v2212_v0 }
 0x44d   :  { %2049 = vmatpush3.bf16.msra.mxu0 %v2346_v28 }
 0x44e   :  { %2050 = vmatprep.subr.bf16.mxu0 %v2212_v0 }
 0x451   :  { %2052 = vmatpush3.bf16.msra.mxu0 %v2356_v34 }
 0x452   :  { %2053 = vmatprep.subr.bf16.mxu0 %v2212_v0 }
 0x455   :  { %2055 = vmatpush3.bf16.msra.mxu0 %v2366_v40 }
 0x456   :  { %2056 = vmatprep.subr.bf16.mxu0 %v2212_v0 }
 0x459   :  { %2058 = vmatpush3.bf16.msra.mxu0 %v2376_v46 }
 0x45a   :  { %2059 = vmatprep.subr.bf16.mxu0 %v2212_v0 }
 0x45d   :  { %2061 = vmatpush3.bf16.msra.mxu0 %v2386_v52 }
 0x45e   :  { %2062 = vmatprep.subr.bf16.mxu0 %v2212_v0 }
 0x461   :  { %2064 = vmatpush3.bf16.msra.mxu0 %v2406_v60 }
 0x517   :  { %v773_v29 = vpop.f32.mrb[4].mxu0 }
 0x518   :  { %v774_v53 = vadd.f32 %v773_v29, %v2538_v61  ;;  %v1683_v59 = vpop.f32.mrb[5].mxu0 }
 0x51a   :  { %v1208_v62 = vmul.f32 -1.442695, %v774_v53 }
 0x51c   :  { %2144 = vpow2.f32 %v1208_v62 }
 0x526   :  { %v2145_v2 = vpop.eup %2144 }
 0x527   :  { %v780_v5 = vadd.f32 1.0, %v2145_v2 }
 0x529   :  { %2146 = vrcp.f32 %v780_v5 }
 0x533   :  { %v2147_v6 = vpop.eup %2146 }
 0x534   :  { %v784_v7 = vsub.f32 1.0, %v2147_v6  ;;  %v783_v8 = vmul.f32 %v2147_v6, %v2616_v57 }
 0x536   :  { %v785_v9 = vmul.f32 %v784_v7, %v2523_v38 }
 0x538   :  { %v2639_v10 = vadd.f32 %v785_v9, %v783_v8 }
 0x53a   :  { %1717 = vmatmul.mubr.f32.vlgmr.msra.gmra.mrb[20].mxu1 %v2639_v10 }
 0x53b   :  { %2067 = vmatpush3.bf16.msra.mxu1 %v2327_v16  ;;  %1786 = vmatprep.mubr.msk.f32.mxu1 %vm2213_vm0, %v2214_v1  ;;  %v1052_v1 = vld [vmem:[#allocation7] sm:$0xff]  ;;  %v1053_v16 = vld [vmem:[#allocation7 + $0x8] sm:$0xff] }
 0x53c   :  { %2068 = vmatprep.subr.bf16.mxu1 %v2212_v0 }
 0x53f   :  { %2070 = vmatpush3.bf16.msra.mxu1 %v2336_v22  ;;  %v2089_v22 = vpack.c.bf16 %v1053_v16, %v1052_v1 }
 0x540   :  { %2071 = vmatprep.subr.bf16.mxu1 %v2212_v0 }
 0x541   :  { %2090 = vmatprep.subr.bf16.mxu0 %v2089_v22 }
 0x543   :  { %2073 = vmatpush3.bf16.msra.mxu1 %v2346_v28 }
 0x544   :  { %2074 = vmatprep.subr.bf16.mxu1 %v2212_v0 }
 0x547   :  { %2076 = vmatpush3.bf16.msra.mxu1 %v2356_v34 }
 0x548   :  { %2077 = vmatprep.subr.bf16.mxu1 %v2212_v0 }
 0x54b   :  { %2079 = vmatpush3.bf16.msra.mxu1 %v2366_v40 }
 0x54c   :  { %2080 = vmatprep.subr.bf16.mxu1 %v2212_v0 }
 0x54f   :  { %2082 = vmatpush3.bf16.msra.mxu1 %v2376_v46 }
 0x550   :  { %2083 = vmatprep.subr.bf16.mxu1 %v2212_v0 }
 0x553   :  { %2085 = vmatpush3.bf16.msra.mxu1 %v2386_v52  ;;  %v1054_v52 = vld [vmem:[#allocation7 + $0x10] sm:$0xff] }
 0x554   :  { %2086 = vmatprep.subr.bf16.mxu1 %v2212_v0  ;;  %v2093_v17 = vpack.c.bf16 %v1055_v14, %v1054_v52 }
 0x557   :  { %2088 = vmatpush3.bf16.msra.mxu1 %v2406_v60 }
 0x60d   :  { %v858_v28 = vpop.f32.mrb[20].mxu1 }
 0x60e   :  { %v859_v34 = vadd.f32 %v858_v28, %v2536_v58  ;;  %v1718_v40 = vpop.f32.mrb[21].mxu1  ;;  %v2097_v58 = vpack.c.bf16 %v1057_v19, %v1056_v18 }
 0x610   :  { %v1209_v38 = vmul.f32 -1.442695, %v859_v34 }
 0x612   :  { %2148 = vpow2.f32 %v1209_v38 }
 0x61c   :  { %v2149_v61 = vpop.eup %2148 }
 0x61d   :  { %v865_v46 = vadd.f32 1.0, %v2149_v61 }
 0x61f   :  { %2150 = vrcp.f32 %v865_v46 }
 0x629   :  { %v2151_v12 = vpop.eup %2150 }
 0x62a   :  { %v869_v4 = vsub.f32 1.0, %v2151_v12  ;;  %v868_v0 = vmul.f32 %v2151_v12, %v2639_v10 }
 0x62c   :  { %v870_v60 = vmul.f32 %v869_v4, %v2521_v36  ;;  %v2105_v36 = vpack.c.bf16 %v1061_v25, %v1060_v23 }
 0x62e   :  { %v871_v15 = vadd.f32 %v870_v60, %v868_v0 }
 0x630   :  { %1752 = vmatmul.mubr.f32.vlgmr.msra.gmra.mrb[6].mxu0 %v871_v15 }
 0x631   :  { %2092 = vmatpush3.bf16.msra.mxu0 %v2089_v22  ;;  %1821 = vmatprep.mubr.f32.mxu0 %v2545_v13  ;;  %v2113_v13 = vpack.c.bf16 %v1065_v33, %v1064_v32 }
 0x632   :  { %2094 = vmatprep.subr.bf16.mxu0 %v2093_v17 }
 0x635   :  { %2096 = vmatpush3.bf16.msra.mxu0 %v2093_v17 }
 0x636   :  { %2098 = vmatprep.subr.bf16.mxu0 %v2097_v58 }
 0x639   :  { %2100 = vmatpush3.bf16.msra.mxu0 %v2097_v58 }
 0x63a   :  { %2102 = vmatprep.subr.bf16.mxu0 %v2101_v21 }
 0x63d   :  { %2104 = vmatpush3.bf16.msra.mxu0 %v2101_v21 }
 0x63e   :  { %2106 = vmatprep.subr.bf16.mxu0 %v2105_v36 }
 0x641   :  { %2108 = vmatpush3.bf16.msra.mxu0 %v2105_v36 }
 0x642   :  { %2110 = vmatprep.subr.bf16.mxu0 %v2109_v30 }
 0x645   :  { %2112 = vmatpush3.bf16.msra.mxu0 %v2109_v30 }
 0x646   :  { %2114 = vmatprep.subr.bf16.mxu0 %v2113_v13 }
 0x649   :  { %2116 = vmatpush3.bf16.msra.mxu0 %v2113_v13 }
 0x64a   :  { %2118 = vmatprep.subr.bf16.mxu0 %v2117_v39 }
 0x64d   :  { %2120 = vmatpush3.bf16.msra.mxu0 %v2117_v39 }
 0x650   :  { %1822 = vmatmul.mubr.f32.vlgmr.msra.gmra.mrb[8].mxu0 %v2568_v24  ;;  %v1212_v24 = vld [vmem:[%s2708_s7] ss:$0 sm:$0xff] }
 0x651   :  { %1824 = vmatprep.mubr.f32.mxu0 %v2592_v44 }
 0x654   :  { %1825 = vmatmul.mubr.f32.gmra.mrb[10].mxu0 %v2616_v57 }
 0x655   :  { %1827 = vmatprep.mubr.f32.mxu0 %v2639_v10 }
 0x658   :  { %1828 = vmatmul.mubr.f32.gmra.mrb[12].mxu0 %v871_v15 }
 0x703   :  { %v943_v42 = vpop.f32.mrb[6].mxu0 }
 0x704   :  { %v944_v31 = vadd.f32 %v943_v42, %v2542_v3  ;;  %v1753_v45 = vpop.f32.mrb[7].mxu0 }
 0x706   :  { %v1210_v47 = vmul.f32 -1.442695, %v944_v31 }
 0x708   :  { %2152 = vpow2.f32 %v1210_v47 }
 0x712   :  { %v2153_v48 = vpop.eup %2152 }
 0x713   :  { %v950_v49 = vadd.f32 1.0, %v2153_v48 }
 0x715   :  { %2154 = vrcp.f32 %v950_v49 }
 0x71f   :  { %v2155_v50 = vpop.eup %2154 }
 0x720   :  { %v954_v51 = vsub.f32 1.0, %v2155_v50  ;;  %v953_v44 = vmul.f32 %v2155_v50, %v871_v15 }
 0x722   :  { %v955_v54 = vmul.f32 %v954_v51, %v2527_v43 }
 0x723   :  { %v1823_v55 = vpop.f32.mrb[8].mxu0 }
 0x724   :  { %v1147_v56 = vadd.f32 %v1823_v55, %v1212_v24  ;;  %v1141_v57 = vpop.f32.mrb[9].mxu0  ;;  %v956_v29 = vadd.f32 %v955_v54, %v953_v44 }
 0x725   :  { %v1142_v3 = vadd.f32 %v1212_v24, %v1141_v57 }
 0x726   :  { %1181 = vst [vmem:[%s2710_s9 + $0x8] sm:$0xff] %v1147_v56  ;;  %1787 = vmatmul.mubr.f32.vlgmr.msra.gmra.mrb[22].mxu1 %v956_v29  ;;  %1830 = vmatprep.mubr.f32.mxu0 %v956_v29 }
 0x727   :  { %1180 = vst [vmem:[%s2710_s9] sm:$0xff] %v1142_v3  ;;  %v1826_v53 = vpop.f32.mrb[10].mxu0 }
 0x728   :  { %v1157_v59 = vadd.f32 %v1826_v53, %v1212_v24  ;;  %v1151_v62 = vpop.f32.mrb[11].mxu0 }
 0x729   :  { %v1152_v2 = vadd.f32 %v1212_v24, %v1151_v62 }
 0x72a   :  { %1183 = vst [vmem:[%s2710_s9 + $0x18] sm:$0xff] %v1157_v59 }
 0x72b   :  { %1182 = vst [vmem:[%s2710_s9 + $0x10] sm:$0xff] %v1152_v2  ;;  %v1829_v43 = vpop.f32.mrb[12].mxu0 }
 0x72c   :  { %v1167_v5 = vadd.f32 %v1829_v43, %v1212_v24  ;;  %v1161_v6 = vpop.f32.mrb[13].mxu0 }
 0x72d   :  { %v1162_v7 = vadd.f32 %v1212_v24, %v1161_v6 }
 0x72e   :  { %1185 = vst [vmem:[%s2710_s9 + $0x28] sm:$0xff] %v1167_v5 }
 0x72f   :  { %1184 = vst [vmem:[%s2710_s9 + $0x20] sm:$0xff] %v1162_v7 }
 0x7f9   :  { %v1028_v8 = vpop.f32.mrb[22].mxu1 }
 0x7fa   :  { %v1029_v9 = vadd.f32 %v1028_v8, %v2540_v63  ;;  %v1788_v10 = vpop.f32.mrb[23].mxu1 }
 0x7fc   :  { %v1211_v1 = vmul.f32 -1.442695, %v1029_v9 }
 0x7fe   :  { %2156 = vpow2.f32 %v1211_v1 }
 0x808   :  { %v2157_v16 = vpop.eup %2156 }
 0x809   :  { %v1035_v22 = vadd.f32 1.0, %v2157_v16 }
 0x80b   :  { %2158 = vrcp.f32 %v1035_v22 }
 0x815   :  { %v2159_v28 = vpop.eup %2158 }
 0x816   :  { %v1039_v34 = vsub.f32 1.0, %v2159_v28  ;;  %v1038_v40 = vmul.f32 %v2159_v28, %v956_v29 }
 0x818   :  { %v1040_v38 = vmul.f32 %v1039_v34, %v2525_v41 }
 0x81a   :  { %v1041_v61 = vadd.f32 %v1040_v38, %v1038_v40 }
 0x81c   :  { %1831 = vmatmul.mubr.f32.gmra.mrb[14].mxu0 %v1041_v61  ;;  %1191 = vst [vmem:[%s2711_s10] sm:$0xff] %v1041_v61 }
 0x8ef   :  { %v1832_v46 = vpop.f32.mrb[14].mxu0 }
 0x8f0   :  { %v1177_v12 = vadd.f32 %v1832_v46, %v1212_v24  ;;  %v1171_v63 = vpop.f32.mrb[15].mxu0 }
 0x8f1   :  { %v1172_v4 = vadd.f32 %v1212_v24, %v1171_v63 }
 0x8f2   :  { %1187 = vst [vmem:[%s2710_s9 + $0x38] sm:$0xff] %v1177_v12 }
 0x8f3   :  { %1186 = vst [vmem:[%s2710_s9 + $0x30] sm:$0xff] %v1172_v4 }
 0x8f4   :  { %1200 = vsyncpa [#allocation6], 1 }
 0x8f5   :  { %1201 = vsyncpa [#allocation8], 1 }

</bundles_post_ra>
